<compile_context>
chip_gen: v5e
topology: v5e:2x2
jax: 0.10.0
libtpu: 0.0.40
codegen_flags: <defaults>
</compile_context>

<pallas_src>
import functools

import jax
import jax.numpy as jnp
from jax import lax
from jax.experimental import pallas as pl
from jax.experimental.pallas import tpu as pltpu

_LN_EPS = 1e-5
_GELU_C = 0.7978845608028654  # sqrt(2/pi)
_NEG_INF = -1e30


def _mosaic_params(dimension_semantics):
    return pltpu.CompilerParams(
        dimension_semantics=dimension_semantics,
        vmem_limit_bytes=64 * 1024 * 1024,
    )


def _tile(dim, pref, mult, *, exact=False):
    """Block size along `dim`: largest multiple of `mult` <= min(pref, dim).

    If `exact`, the tile must evenly divide `dim` (reduction axes, where a padded
    ragged tail would corrupt the accumulation).  Falls back to the full dimension
    (always a legal block) when no suitable multiple exists (tiny toy shapes)."""
    t = min(pref, dim)
    t -= t % mult
    while t >= mult:
        if (not exact) or (dim % t == 0):
            return t
        t -= mult
    return dim


def _ln_f32(x, g, b):
    """LayerNorm in f32 (VPU math stays f32 for v5e).  x:(R, D), g/b:(1, D)."""
    mu = jnp.mean(x, axis=-1, keepdims=True)
    var = jnp.mean(jnp.square(x - mu), axis=-1, keepdims=True)
    return (x - mu) * lax.rsqrt(var + _LN_EPS) * g + b


def _gelu_new(x):
    return 0.5 * x * (1.0 + jnp.tanh(_GELU_C * (x + 0.044715 * x * x * x)))


# -------------------- generic tiled linear (clip_project MLP) --------------------


def _linear_kernel(x_ref, w_ref, b_ref, o_ref, acc_ref, *, act, nk):
    k = pl.program_id(2)

    @pl.when(k == 0)
    def _():
        acc_ref[...] = jnp.zeros_like(acc_ref)

    acc_ref[...] += jnp.dot(
        x_ref[...].astype(jnp.bfloat16),
        w_ref[...].astype(jnp.bfloat16),
        preferred_element_type=jnp.float32,
    )

    @pl.when(k == nk - 1)
    def _():
        y = acc_ref[...] + b_ref[...].astype(jnp.float32)
        if act == "tanh":
            y = jnp.tanh(y)
        elif act == "gelu":
            y = _gelu_new(y)
        o_ref[...] = y.astype(o_ref.dtype)


def linear(x, w, b, act="none", out_dtype=jnp.float32,
           tm_pref=256, tn_pref=512, tk_pref=512):
    """y = act(x @ w + b), tiled over (M, N, K) with an f32 VMEM accumulator."""
    M, K = x.shape
    Kw, N = w.shape
    assert K == Kw
    tm = _tile(M, tm_pref, 8)
    tn = _tile(N, tn_pref, 128)
    tk = _tile(K, tk_pref, 128, exact=True)
    nk = K // tk
    b2 = b.reshape(1, N).astype(jnp.float32)
    return pl.pallas_call(
        functools.partial(_linear_kernel, act=act, nk=nk),
        out_shape=jax.ShapeDtypeStruct((M, N), out_dtype),
        grid=(pl.cdiv(M, tm), pl.cdiv(N, tn), nk),
        in_specs=[
            pl.BlockSpec((tm, tk), lambda i, j, k: (i, k)),
            pl.BlockSpec((tk, tn), lambda i, j, k: (k, j)),
            pl.BlockSpec((1, tn), lambda i, j, k: (0, j)),
        ],
        out_specs=pl.BlockSpec((tm, tn), lambda i, j, k: (i, j)),
        scratch_shapes=[pltpu.VMEM((tm, tn), jnp.float32)],
        compiler_params=_mosaic_params(("parallel", "parallel", "arbitrary")),
    )(x, w, b2)


# -------------------- fused attention sublayer (LN1 + attn + proj + residual) ----


def _attn_block_kernel(x_ref, g_ref, b_ref, wqkv_ref, bqkv_ref, wo_ref, bo_ref,
                       o_ref, *, n_head):
    x = x_ref[0].astype(jnp.float32)                       # (S, D)
    S, D = x.shape
    Dh = D // n_head
    scale = 1.0 / float(Dh) ** 0.5

    xn = _ln_f32(x, g_ref[...].astype(jnp.float32), b_ref[...].astype(jnp.float32))

    qkv = jnp.dot(xn.astype(jnp.bfloat16), wqkv_ref[...].astype(jnp.bfloat16),
                  preferred_element_type=jnp.float32)
    qkv = qkv + bqkv_ref[...].astype(jnp.float32)          # (S, 3D)

    row = lax.broadcasted_iota(jnp.int32, (S, S), 0)
    col = lax.broadcasted_iota(jnp.int32, (S, S), 1)
    causal = col <= row

    heads = []
    for h in range(n_head):                                # static unrolled head loop
        lo = h * Dh
        q = qkv[:, lo:lo + Dh] * scale                     # fold 1/sqrt(Dh) into q
        k = qkv[:, D + lo:D + lo + Dh]
        v = qkv[:, 2 * D + lo:2 * D + lo + Dh]
        s = jnp.dot(q.astype(jnp.bfloat16), k.astype(jnp.bfloat16).T,
                    preferred_element_type=jnp.float32)    # (S, S)
        s = jnp.where(causal, s, _NEG_INF)
        m = jnp.max(s, axis=-1, keepdims=True)
        p = jnp.exp(s - m)
        p = p * pl.reciprocal(jnp.sum(p, axis=-1, keepdims=True), approx=True)
        heads.append(jnp.dot(p.astype(jnp.bfloat16), v.astype(jnp.bfloat16),
                             preferred_element_type=jnp.float32))
    a = jnp.concatenate(heads, axis=-1)                    # (S, D), lane-dense

    out = jnp.dot(a.astype(jnp.bfloat16), wo_ref[...].astype(jnp.bfloat16),
                  preferred_element_type=jnp.float32) + bo_ref[...].astype(jnp.float32)
    o_ref[0] = (x + out).astype(o_ref.dtype)


def attn_sublayer(x, g, b, wqkv, bqkv, wo, bo, *, n_head):
    B, S, D = x.shape
    xspec = pl.BlockSpec((1, S, D), lambda i: (i, 0, 0))
    return pl.pallas_call(
        functools.partial(_attn_block_kernel, n_head=n_head),
        out_shape=jax.ShapeDtypeStruct((B, S, D), x.dtype),
        grid=(B,),
        in_specs=[
            xspec,
            pl.BlockSpec((1, D), lambda i: (0, 0)),
            pl.BlockSpec((1, D), lambda i: (0, 0)),
            pl.BlockSpec((D, 3 * D), lambda i: (0, 0)),
            pl.BlockSpec((1, 3 * D), lambda i: (0, 0)),
            pl.BlockSpec((D, D), lambda i: (0, 0)),
            pl.BlockSpec((1, D), lambda i: (0, 0)),
        ],
        out_specs=xspec,
        compiler_params=_mosaic_params(("parallel",)),
    )(x, g.reshape(1, D), b.reshape(1, D), wqkv, bqkv.reshape(1, 3 * D),
      wo, bo.reshape(1, D))


# -------------------- fused MLP sublayer (LN2 + fc/gelu + proj + residual) --------


def _mlp_block_kernel(x_ref, g_ref, b_ref, wf_ref, bf_ref, wp_ref, bp_ref, o_ref):
    x = x_ref[...].astype(jnp.float32)                     # (tm, D)
    xn = _ln_f32(x, g_ref[...].astype(jnp.float32), b_ref[...].astype(jnp.float32))
    h = jnp.dot(xn.astype(jnp.bfloat16), wf_ref[...].astype(jnp.bfloat16),
                preferred_element_type=jnp.float32) + bf_ref[...].astype(jnp.float32)
    h = _gelu_new(h)
    y = jnp.dot(h.astype(jnp.bfloat16), wp_ref[...].astype(jnp.bfloat16),
                preferred_element_type=jnp.float32) + bp_ref[...].astype(jnp.float32)
    o_ref[...] = (x + y).astype(o_ref.dtype)


def mlp_sublayer(x2d, g, b, wf, bf, wp, bp, tm_pref=256):
    M, D = x2d.shape
    H = wf.shape[1]
    tm = _tile(M, tm_pref, 8)
    return pl.pallas_call(
        _mlp_block_kernel,
        out_shape=jax.ShapeDtypeStruct((M, D), x2d.dtype),
        grid=(pl.cdiv(M, tm),),
        in_specs=[
            pl.BlockSpec((tm, D), lambda i: (i, 0)),
            pl.BlockSpec((1, D), lambda i: (0, 0)),
            pl.BlockSpec((1, D), lambda i: (0, 0)),
            pl.BlockSpec((D, H), lambda i: (0, 0)),
            pl.BlockSpec((1, H), lambda i: (0, 0)),
            pl.BlockSpec((H, D), lambda i: (0, 0)),
            pl.BlockSpec((1, D), lambda i: (0, 0)),
        ],
        out_specs=pl.BlockSpec((tm, D), lambda i: (i, 0)),
        compiler_params=_mosaic_params(("parallel",)),
    )(x2d, g.reshape(1, D), b.reshape(1, D), wf, bf.reshape(1, H), wp,
      bp.reshape(1, D))


# -------------------- fused final LN + tied LM head (no wte.T, no bias) -----------


def _lm_head_kernel(x_ref, g_ref, b_ref, wte_ref, o_ref):
    x = x_ref[...].astype(jnp.float32)
    xn = _ln_f32(x, g_ref[...].astype(jnp.float32), b_ref[...].astype(jnp.float32))
    # Contract against embedding-table rows in-kernel (transpose stays in VMEM).
    o_ref[...] = jnp.dot(
        xn.astype(jnp.bfloat16), wte_ref[...].astype(jnp.bfloat16).T,
        preferred_element_type=jnp.float32,
    ).astype(o_ref.dtype)


def lm_head(x2d, g, b, wte, *, logits_dtype=jnp.float32, tm_pref=256, tn_pref=1024):
    M, D = x2d.shape
    V = wte.shape[0]
    tm = _tile(M, tm_pref, 8)
    tn = _tile(V, tn_pref, 128)
    return pl.pallas_call(
        _lm_head_kernel,
        out_shape=jax.ShapeDtypeStruct((M, V), logits_dtype),
        grid=(pl.cdiv(M, tm), pl.cdiv(V, tn)),
        in_specs=[
            pl.BlockSpec((tm, D), lambda i, j: (i, 0)),
            pl.BlockSpec((1, D), lambda i, j: (0, 0)),
            pl.BlockSpec((1, D), lambda i, j: (0, 0)),
            pl.BlockSpec((tn, D), lambda i, j: (j, 0)),
        ],
        out_specs=pl.BlockSpec((tm, tn), lambda i, j: (i, j)),
        compiler_params=_mosaic_params(("parallel", "parallel")),
    )(x2d, g.reshape(1, D), b.reshape(1, D), wte)


# --------------------------- model (glue in JAX) ---------------------------------


def init_params(key, *, vocab, n_pos, d_model, n_layer, prefix_size, prefix_length):
    # Matmul weights stored in bf16 (half the HBM weight traffic); LN params, biases
    # and position embeddings stay f32.
    def nrm(k, shape, scale=0.02, dtype=jnp.bfloat16):
        return (scale * jax.random.normal(k, shape, dtype=jnp.float32)).astype(dtype)

    keys = iter(jax.random.split(key, 8 + 12 * n_layer))
    p = {
        "wte": nrm(next(keys), (vocab, d_model)),
        "wpe": nrm(next(keys), (n_pos, d_model), dtype=jnp.float32),
        "lnf_g": jnp.ones((d_model,), jnp.float32),
        "lnf_b": jnp.zeros((d_model,), jnp.float32),
        "blocks": [],
    }
    for _ in range(n_layer):
        blk = {
            "ln1_g": jnp.ones((d_model,), jnp.float32),
            "ln1_b": jnp.zeros((d_model,), jnp.float32),
            "c_attn_w": nrm(next(keys), (d_model, 3 * d_model)),
            "c_attn_b": jnp.zeros((3 * d_model,), jnp.float32),
            "attn_proj_w": nrm(next(keys), (d_model, d_model)),
            "attn_proj_b": jnp.zeros((d_model,), jnp.float32),
            "ln2_g": jnp.ones((d_model,), jnp.float32),
            "ln2_b": jnp.zeros((d_model,), jnp.float32),
            "fc_w": nrm(next(keys), (d_model, 4 * d_model)),
            "fc_b": jnp.zeros((4 * d_model,), jnp.float32),
            "proj_w": nrm(next(keys), (4 * d_model, d_model)),
            "proj_b": jnp.zeros((d_model,), jnp.float32),
        }
        p["blocks"].append(blk)
    # clip_project MLP sizes: (prefix_size, D*prefix_len//2, D*prefix_len), Tanh between.
    hid = d_model * prefix_length // 2
    out = d_model * prefix_length
    p["clip_w1"] = nrm(next(keys), (prefix_size, hid))
    p["clip_b1"] = jnp.zeros((hid,), jnp.float32)
    p["clip_w2"] = nrm(next(keys), (hid, out))
    p["clip_b2"] = jnp.zeros((out,), jnp.float32)
    return p


def clip_caption_forward(tokens, prefix, params, *, prefix_length, n_head,
                         logits_dtype=jnp.float32):
    B, _ = tokens.shape
    V, D = params["wte"].shape

    # embedding_text = self.gpt.transformer.wte(tokens)
    embedding_text = jnp.take(params["wte"], tokens, axis=0).astype(jnp.float32)

    # prefix_projections = self.clip_project(prefix).view(-1, prefix_length, D)
    h = linear(prefix.astype(jnp.float32), params["clip_w1"], params["clip_b1"],
               act="tanh")
    h = linear(h, params["clip_w2"], params["clip_b2"])
    prefix_proj = h.reshape(-1, prefix_length, D)

    # embedding_cat = cat((prefix_projections, embedding_text), dim=1); add wpe.
    x = jnp.concatenate([prefix_proj, embedding_text], axis=1)   # (B, S, D)
    S = x.shape[1]
    h = x + params["wpe"][:S][None, :, :]

    for blk in params["blocks"]:
        h = attn_sublayer(h, blk["ln1_g"], blk["ln1_b"], blk["c_attn_w"],
                          blk["c_attn_b"], blk["attn_proj_w"], blk["attn_proj_b"],
                          n_head=n_head)
        h = mlp_sublayer(h.reshape(B * S, D), blk["ln2_g"], blk["ln2_b"],
                         blk["fc_w"], blk["fc_b"], blk["proj_w"], blk["proj_b"]
                         ).reshape(B, S, D)

    logits = lm_head(h.reshape(B * S, D), params["lnf_g"], params["lnf_b"],
                     params["wte"], logits_dtype=logits_dtype)
    return logits.reshape(B, S, V)


# --------------------------------- main -------------------------------------------

if __name__ == "__main__":
    # Small synthetic config (GPT-2 scaled down).
    PREFIX_LENGTH = 4
    PREFIX_SIZE = 32     # prefix_size (CLIP feature dim)
    D_MODEL = 32         # gpt_embedding_size
    VOCAB = 64
    N_POS = 32
    N_LAYER = 2
    N_HEAD = 2
    B = 2
    T_TOK = 8

    key = jax.random.PRNGKey(0)
    k_par, k_tok, k_pre = jax.random.split(key, 3)

    params = init_params(
        k_par, vocab=VOCAB, n_pos=N_POS, d_model=D_MODEL, n_layer=N_LAYER,
        prefix_size=PREFIX_SIZE, prefix_length=PREFIX_LENGTH,
    )

    tokens = jax.random.randint(k_tok, (B, T_TOK), 0, VOCAB, dtype=jnp.int32)
    prefix = jax.random.normal(k_pre, (B, PREFIX_SIZE), dtype=jnp.float32)

    fwd = jax.jit(
        functools.partial(clip_caption_forward, prefix_length=PREFIX_LENGTH,
                          n_head=N_HEAD)
    )
    logits = fwd(tokens, prefix, params)
    jax.block_until_ready(logits)

    assert logits.shape == (B, PREFIX_LENGTH + T_TOK, VOCAB), logits.shape
    assert bool(jnp.all(jnp.isfinite(logits)))
    print("KERNEL_OK")
</pallas_src>

<mosaic_0001>
module attributes {stable_mosaic.version = 11 : i64} {
  func.func @_linear_kernel(%arg0: i32, %arg1: i32, %arg2: i32, %arg3: memref<2x32xf32, #tpu.memory_space<vmem>>, %arg4: memref<32x64xbf16, #tpu.memory_space<vmem>>, %arg5: memref<1x64xf32, #tpu.memory_space<vmem>>, %arg6: memref<2x64xf32, #tpu.memory_space<vmem>>, %arg7: memref<2x64xf32, #tpu.memory_space<vmem>>) attributes {dimension_semantics = [#tpu.dimension_semantics<parallel>, #tpu.dimension_semantics<parallel>, #tpu.dimension_semantics<arbitrary>], iteration_bounds = array<i64: 1, 1, 1>, scalar_prefetch = 0 : i64, scratch_operands = 1 : i64, tpu.core_type = #tpu.core_type<tc>, window_params = [{transform_indices = @transform_0, window_bounds = array<i64: 2, 32>}, {transform_indices = @transform_1, window_bounds = array<i64: 32, 64>}, {transform_indices = @transform_2, window_bounds = array<i64: 1, 64>}, {transform_indices = @transform_3, window_bounds = array<i64: 2, 64>}]} {
    %c0_i32 = arith.constant 0 : i32
    %0 = arith.cmpi eq, %arg2, %c0_i32 : i32
    %1 = arith.extui %0 : i1 to i32
    %c0_i32_0 = arith.constant 0 : i32
    %2 = arith.cmpi ne, %1, %c0_i32_0 : i32
    scf.if %2 {
      %cst_10 = arith.constant 0.000000e+00 : f32
      %13 = vector.broadcast %cst_10 : f32 to vector<2x64xf32>
      %c0_11 = arith.constant 0 : index
      %c0_12 = arith.constant 0 : index
      %14 = vector.load %arg7[%c0_11, %c0_12] : memref<2x64xf32, #tpu.memory_space<vmem>>, vector<2x64xf32>
      tpu.vector_store %arg7[%c0_11, %c0_12], %13 {strides = array<i32>} : memref<2x64xf32, #tpu.memory_space<vmem>>, vector<2x64xf32>,
    } else {
    }
    %c0 = arith.constant 0 : index
    %c0_1 = arith.constant 0 : index
    %3 = vector.load %arg7[%c0, %c0_1] : memref<2x64xf32, #tpu.memory_space<vmem>>, vector<2x64xf32>
    %c0_2 = arith.constant 0 : index
    %c0_3 = arith.constant 0 : index
    %4 = vector.load %arg3[%c0_2, %c0_3] : memref<2x32xf32, #tpu.memory_space<vmem>>, vector<2x32xf32>
    %5 = arith.truncf %4 : vector<2x32xf32> to vector<2x32xbf16>
    %c0_4 = arith.constant 0 : index
    %c0_5 = arith.constant 0 : index
    %6 = vector.load %arg4[%c0_4, %c0_5] : memref<32x64xbf16, #tpu.memory_space<vmem>>, vector<32x64xbf16>
    %cst = arith.constant dense<0.000000e+00> : vector<2x64xf32>
    %7 = tpu.matmul %5, %6, %cst {dimension_numbers = #tpu.dot_dimension_numbers<[1], [0], [0], [1], [0, 0, 1, 1], [], []>} : vector<2x32xbf16>, vector<32x64xbf16>, vector<2x64xf32> -> vector<2x64xf32>
    %8 = arith.addf %3, %7 : vector<2x64xf32>
    %c0_6 = arith.constant 0 : index
    %c0_7 = arith.constant 0 : index
    %9 = vector.load %arg7[%c0_6, %c0_7] : memref<2x64xf32, #tpu.memory_space<vmem>>, vector<2x64xf32>
    tpu.vector_store %arg7[%c0_6, %c0_7], %8 {strides = array<i32>} : memref<2x64xf32, #tpu.memory_space<vmem>>, vector<2x64xf32>,
    %c0_i32_8 = arith.constant 0 : i32
    %10 = arith.cmpi eq, %arg2, %c0_i32_8 : i32
    %11 = arith.extui %10 : i1 to i32
    %c0_i32_9 = arith.constant 0 : i32
    %12 = arith.cmpi ne, %11, %c0_i32_9 : i32
    scf.if %12 {
      %c0_10 = arith.constant 0 : index
      %c0_11 = arith.constant 0 : index
      %13 = vector.load %arg7[%c0_10, %c0_11] : memref<2x64xf32, #tpu.memory_space<vmem>>, vector<2x64xf32>
      %c0_12 = arith.constant 0 : index
      %c0_13 = arith.constant 0 : index
      %14 = vector.load %arg5[%c0_12, %c0_13] : memref<1x64xf32, #tpu.memory_space<vmem>>, vector<1x64xf32>
      %15 = vector.broadcast %14 : vector<1x64xf32> to vector<2x64xf32>
      %16 = arith.addf %13, %15 : vector<2x64xf32>
      %17 = math.tanh %16 : vector<2x64xf32>
      %c0_14 = arith.constant 0 : index
      %c0_15 = arith.constant 0 : index
      %18 = vector.load %arg6[%c0_14, %c0_15] : memref<2x64xf32, #tpu.memory_space<vmem>>, vector<2x64xf32>
      tpu.vector_store %arg6[%c0_14, %c0_15], %17 {strides = array<i32>} : memref<2x64xf32, #tpu.memory_space<vmem>>, vector<2x64xf32>,
    } else {
    }
    return
  }
  func.func @transform_0(%arg0: i32, %arg1: i32, %arg2: i32) -> (i32, i32) {
    %c0_i32 = arith.constant 0 : i32
    return %arg0, %arg2 : i32, i32
  }
  func.func @transform_1(%arg0: i32, %arg1: i32, %arg2: i32) -> (i32, i32) {
    %c0_i32 = arith.constant 0 : i32
    return %arg2, %arg1 : i32, i32
  }
  func.func @transform_2(%arg0: i32, %arg1: i32, %arg2: i32) -> (i32, i32) {
    %c0_i32 = arith.constant 0 : i32
    %c0_i32_0 = arith.constant 0 : i32
    return %c0_i32, %arg1 : i32, i32
  }
  func.func @transform_3(%arg0: i32, %arg1: i32, %arg2: i32) -> (i32, i32) {
    %c0_i32 = arith.constant 0 : i32
    return %arg0, %arg1 : i32, i32
  }
}

module attributes {stable_mosaic.version = 11 : i64} {
  func.func @_linear_kernel(%arg0: i32, %arg1: i32, %arg2: i32, %arg3: memref<2x64xf32, #tpu.memory_space<vmem>>, %arg4: memref<64x128xbf16, #tpu.memory_space<vmem>>, %arg5: memref<1x128xf32, #tpu.memory_space<vmem>>, %arg6: memref<2x128xf32, #tpu.memory_space<vmem>>, %arg7: memref<2x128xf32, #tpu.memory_space<vmem>>) attributes {dimension_semantics = [#tpu.dimension_semantics<parallel>, #tpu.dimension_semantics<parallel>, #tpu.dimension_semantics<arbitrary>], iteration_bounds = array<i64: 1, 1, 1>, scalar_prefetch = 0 : i64, scratch_operands = 1 : i64, tpu.core_type = #tpu.core_type<tc>, window_params = [{transform_indices = @transform_0, window_bounds = array<i64: 2, 64>}, {transform_indices = @transform_1, window_bounds = array<i64: 64, 128>}, {transform_indices = @transform_2, window_bounds = array<i64: 1, 128>}, {transform_indices = @transform_3, window_bounds = array<i64: 2, 128>}]} {
    %c0_i32 = arith.constant 0 : i32
    %0 = arith.cmpi eq, %arg2, %c0_i32 : i32
    %1 = arith.extui %0 : i1 to i32
    %c0_i32_0 = arith.constant 0 : i32
    %2 = arith.cmpi ne, %1, %c0_i32_0 : i32
    scf.if %2 {
      %cst_10 = arith.constant 0.000000e+00 : f32
      %13 = vector.broadcast %cst_10 : f32 to vector<2x128xf32>
      %c0_11 = arith.constant 0 : index
      %c0_12 = arith.constant 0 : index
      %14 = vector.load %arg7[%c0_11, %c0_12] : memref<2x128xf32, #tpu.memory_space<vmem>>, vector<2x128xf32>
      tpu.vector_store %arg7[%c0_11, %c0_12], %13 {strides = array<i32>} : memref<2x128xf32, #tpu.memory_space<vmem>>, vector<2x128xf32>,
    } else {
    }
    %c0 = arith.constant 0 : index
    %c0_1 = arith.constant 0 : index
    %3 = vector.load %arg7[%c0, %c0_1] : memref<2x128xf32, #tpu.memory_space<vmem>>, vector<2x128xf32>
    %c0_2 = arith.constant 0 : index
    %c0_3 = arith.constant 0 : index
    %4 = vector.load %arg3[%c0_2, %c0_3] : memref<2x64xf32, #tpu.memory_space<vmem>>, vector<2x64xf32>
    %5 = arith.truncf %4 : vector<2x64xf32> to vector<2x64xbf16>
    %c0_4 = arith.constant 0 : index
    %c0_5 = arith.constant 0 : index
    %6 = vector.load %arg4[%c0_4, %c0_5] : memref<64x128xbf16, #tpu.memory_space<vmem>>, vector<64x128xbf16>
    %cst = arith.constant dense<0.000000e+00> : vector<2x128xf32>
    %7 = tpu.matmul %5, %6, %cst {dimension_numbers = #tpu.dot_dimension_numbers<[1], [0], [0], [1], [0, 0, 1, 1], [], []>} : vector<2x64xbf16>, vector<64x128xbf16>, vector<2x128xf32> -> vector<2x128xf32>
    %8 = arith.addf %3, %7 : vector<2x128xf32>
    %c0_6 = arith.constant 0 : index
    %c0_7 = arith.constant 0 : index
    %9 = vector.load %arg7[%c0_6, %c0_7] : memref<2x128xf32, #tpu.memory_space<vmem>>, vector<2x128xf32>
    tpu.vector_store %arg7[%c0_6, %c0_7], %8 {strides = array<i32>} : memref<2x128xf32, #tpu.memory_space<vmem>>, vector<2x128xf32>,
    %c0_i32_8 = arith.constant 0 : i32
    %10 = arith.cmpi eq, %arg2, %c0_i32_8 : i32
    %11 = arith.extui %10 : i1 to i32
    %c0_i32_9 = arith.constant 0 : i32
    %12 = arith.cmpi ne, %11, %c0_i32_9 : i32
    scf.if %12 {
      %c0_10 = arith.constant 0 : index
      %c0_11 = arith.constant 0 : index
      %13 = vector.load %arg7[%c0_10, %c0_11] : memref<2x128xf32, #tpu.memory_space<vmem>>, vector<2x128xf32>
      %c0_12 = arith.constant 0 : index
      %c0_13 = arith.constant 0 : index
      %14 = vector.load %arg5[%c0_12, %c0_13] : memref<1x128xf32, #tpu.memory_space<vmem>>, vector<1x128xf32>
      %15 = vector.broadcast %14 : vector<1x128xf32> to vector<2x128xf32>
      %16 = arith.addf %13, %15 : vector<2x128xf32>
      %c0_14 = arith.constant 0 : index
      %c0_15 = arith.constant 0 : index
      %17 = vector.load %arg6[%c0_14, %c0_15] : memref<2x128xf32, #tpu.memory_space<vmem>>, vector<2x128xf32>
      tpu.vector_store %arg6[%c0_14, %c0_15], %16 {strides = array<i32>} : memref<2x128xf32, #tpu.memory_space<vmem>>, vector<2x128xf32>,
    } else {
    }
    return
  }
  func.func @transform_0(%arg0: i32, %arg1: i32, %arg2: i32) -> (i32, i32) {
    %c0_i32 = arith.constant 0 : i32
    return %arg0, %arg2 : i32, i32
  }
  func.func @transform_1(%arg0: i32, %arg1: i32, %arg2: i32) -> (i32, i32) {
    %c0_i32 = arith.constant 0 : i32
    return %arg2, %arg1 : i32, i32
  }
  func.func @transform_2(%arg0: i32, %arg1: i32, %arg2: i32) -> (i32, i32) {
    %c0_i32 = arith.constant 0 : i32
    %c0_i32_0 = arith.constant 0 : i32
    return %c0_i32, %arg1 : i32, i32
  }
  func.func @transform_3(%arg0: i32, %arg1: i32, %arg2: i32) -> (i32, i32) {
    %c0_i32 = arith.constant 0 : i32
    return %arg0, %arg1 : i32, i32
  }
}

module attributes {stable_mosaic.version = 11 : i64} {
  func.func @_attn_block_kernel(%arg0: i32, %arg1: memref<1x12x32xf32, #tpu.memory_space<vmem>>, %arg2: memref<1x32xf32, #tpu.memory_space<vmem>>, %arg3: memref<1x32xf32, #tpu.memory_space<vmem>>, %arg4: memref<32x96xbf16, #tpu.memory_space<vmem>>, %arg5: memref<1x96xf32, #tpu.memory_space<vmem>>, %arg6: memref<32x32xbf16, #tpu.memory_space<vmem>>, %arg7: memref<1x32xf32, #tpu.memory_space<vmem>>, %arg8: memref<1x12x32xf32, #tpu.memory_space<vmem>>) attributes {dimension_semantics = [#tpu.dimension_semantics<parallel>], iteration_bounds = array<i64: 2>, scalar_prefetch = 0 : i64, scratch_operands = 0 : i64, tpu.core_type = #tpu.core_type<tc>, window_params = [{transform_indices = @transform_0, window_bounds = array<i64: 1, 12, 32>}, {pipeline_mode = #tpu.pipeline_mode<synchronous>, transform_indices = @transform_1, window_bounds = array<i64: 1, 32>}, {pipeline_mode = #tpu.pipeline_mode<synchronous>, transform_indices = @transform_2, window_bounds = array<i64: 1, 32>}, {pipeline_mode = #tpu.pipeline_mode<synchronous>, transform_indices = @transform_3, window_bounds = array<i64: 32, 96>}, {pipeline_mode = #tpu.pipeline_mode<synchronous>, transform_indices = @transform_4, window_bounds = array<i64: 1, 96>}, {pipeline_mode = #tpu.pipeline_mode<synchronous>, transform_indices = @transform_5, window_bounds = array<i64: 32, 32>}, {pipeline_mode = #tpu.pipeline_mode<synchronous>, transform_indices = @transform_6, window_bounds = array<i64: 1, 32>}, {transform_indices = @transform_7, window_bounds = array<i64: 1, 12, 32>}]} {
    %c0 = arith.constant 0 : index
    %c0_0 = arith.constant 0 : index
    %c0_1 = arith.constant 0 : index
    %0 = vector.load %arg1[%c0, %c0_0, %c0_1] : memref<1x12x32xf32, #tpu.memory_space<vmem>>, vector<1x12x32xf32>
    %1 = vector.shape_cast %0 : vector<1x12x32xf32> to vector<12x32xf32>
    %c0_2 = arith.constant 0 : index
    %c0_3 = arith.constant 0 : index
    %2 = vector.load %arg2[%c0_2, %c0_3] : memref<1x32xf32, #tpu.memory_space<vmem>>, vector<1x32xf32>
    %c0_4 = arith.constant 0 : index
    %c0_5 = arith.constant 0 : index
    %3 = vector.load %arg3[%c0_4, %c0_5] : memref<1x32xf32, #tpu.memory_space<vmem>>, vector<1x32xf32>
    %cst = arith.constant dense<0.000000e+00> : vector<12xf32>
    %4 = vector.multi_reduction <add>, %1, %cst [1] : vector<12x32xf32> to vector<12xf32>
    %5 = vector.shape_cast %4 : vector<12xf32> to vector<12x1xf32>
    %cst_6 = arith.constant 3.200000e+01 : f32
    %6 = vector.broadcast %cst_6 : f32 to vector<12x1xf32>
    %7 = arith.divf %5, %6 : vector<12x1xf32>
    %8 = vector.broadcast %7 : vector<12x1xf32> to vector<12x32xf32>
    %9 = arith.subf %1, %8 : vector<12x32xf32>
    %10 = arith.mulf %9, %9 : vector<12x32xf32>
    %cst_7 = arith.constant dense<0.000000e+00> : vector<12xf32>
    %11 = vector.multi_reduction <add>, %10, %cst_7 [1] : vector<12x32xf32> to vector<12xf32>
    %12 = vector.shape_cast %11 : vector<12xf32> to vector<12x1xf32>
    %cst_8 = arith.constant 3.200000e+01 : f32
    %13 = vector.broadcast %cst_8 : f32 to vector<12x1xf32>
    %14 = arith.divf %12, %13 : vector<12x1xf32>
    %15 = vector.broadcast %7 : vector<12x1xf32> to vector<12x32xf32>
    %16 = arith.subf %1, %15 : vector<12x32xf32>
    %cst_9 = arith.constant 9.99999974E-6 : f32
    %17 = vector.broadcast %cst_9 : f32 to vector<12x1xf32>
    %18 = arith.addf %14, %17 : vector<12x1xf32>
    %19 = math.rsqrt %18 : vector<12x1xf32>
    %20 = vector.broadcast %19 : vector<12x1xf32> to vector<12x32xf32>
    %21 = arith.mulf %16, %20 : vector<12x32xf32>
    %22 = vector.broadcast %2 : vector<1x32xf32> to vector<12x32xf32>
    %23 = arith.mulf %21, %22 : vector<12x32xf32>
    %24 = vector.broadcast %3 : vector<1x32xf32> to vector<12x32xf32>
    %25 = arith.addf %23, %24 : vector<12x32xf32>
    %26 = arith.truncf %25 : vector<12x32xf32> to vector<12x32xbf16>
    %c0_10 = arith.constant 0 : index
    %c0_11 = arith.constant 0 : index
    %27 = vector.load %arg4[%c0_10, %c0_11] : memref<32x96xbf16, #tpu.memory_space<vmem>>, vector<32x96xbf16>
    %cst_12 = arith.constant dense<0.000000e+00> : vector<12x96xf32>
    %28 = tpu.matmul %26, %27, %cst_12 {dimension_numbers = #tpu.dot_dimension_numbers<[1], [0], [0], [1], [0, 0, 1, 1], [], []>} : vector<12x32xbf16>, vector<32x96xbf16>, vector<12x96xf32> -> vector<12x96xf32>
    %c0_13 = arith.constant 0 : index
    %c0_14 = arith.constant 0 : index
    %29 = vector.load %arg5[%c0_13, %c0_14] : memref<1x96xf32, #tpu.memory_space<vmem>>, vector<1x96xf32>
    %30 = vector.broadcast %29 : vector<1x96xf32> to vector<12x96xf32>
    %31 = arith.addf %28, %30 : vector<12x96xf32>
    %32 = tpu.iota {dimensions = array<i32: 0>} : vector<12x12xi32>
    %33 = tpu.iota {dimensions = array<i32: 1>} : vector<12x12xi32>
    %34 = arith.cmpi sle, %33, %32 : vector<12x12xi32>
    %35 = vector.extract_strided_slice %31 {offsets = [0, 0], sizes = [12, 16], strides = [1, 1]} : vector<12x96xf32> to vector<12x16xf32>
    %cst_15 = arith.constant 2.500000e-01 : f32
    %36 = vector.broadcast %cst_15 : f32 to vector<12x16xf32>
    %37 = arith.mulf %35, %36 : vector<12x16xf32>
    %38 = vector.extract_strided_slice %31 {offsets = [0, 32], sizes = [12, 16], strides = [1, 1]} : vector<12x96xf32> to vector<12x16xf32>
    %39 = vector.extract_strided_slice %31 {offsets = [0, 64], sizes = [12, 16], strides = [1, 1]} : vector<12x96xf32> to vector<12x16xf32>
    %40 = arith.truncf %37 : vector<12x16xf32> to vector<12x16xbf16>
    %41 = arith.truncf %38 : vector<12x16xf32> to vector<12x16xbf16>
    %42 = tpu.transpose %41, [1, 0] : vector<12x16xbf16> -> vector<16x12xbf16>
    %cst_16 = arith.constant dense<0.000000e+00> : vector<12x12xf32>
    %43 = tpu.matmul %40, %42, %cst_16 {dimension_numbers = #tpu.dot_dimension_numbers<[1], [0], [0], [1], [0, 0, 1, 1], [], []>} : vector<12x16xbf16>, vector<16x12xbf16>, vector<12x12xf32> -> vector<12x12xf32>
    %cst_17 = arith.constant -1.000000e+30 : f32
    %44 = vector.broadcast %cst_17 : f32 to vector<12x12xf32>
    %45 = arith.select %34, %43, %44 : vector<12x12xi1>, vector<12x12xf32>
    %cst_18 = arith.constant dense<0xFF800000> : vector<12xf32>
    %46 = vector.multi_reduction <maximumf>, %45, %cst_18 [1] : vector<12x12xf32> to vector<12xf32>
    %47 = vector.shape_cast %46 : vector<12xf32> to vector<12x1xf32>
    %48 = vector.broadcast %47 : vector<12x1xf32> to vector<12x12xf32>
    %49 = arith.subf %45, %48 : vector<12x12xf32>
    %50 = math.exp %49 : vector<12x12xf32>
    %cst_19 = arith.constant dense<0.000000e+00> : vector<12xf32>
    %51 = vector.multi_reduction <add>, %50, %cst_19 [1] : vector<12x12xf32> to vector<12xf32>
    %52 = vector.shape_cast %51 : vector<12xf32> to vector<12x1xf32>
    %53 = tpu.reciprocal %52 {approx = true} : vector<12x1xf32> -> vector<12x1xf32>
    %54 = vector.broadcast %53 : vector<12x1xf32> to vector<12x12xf32>
    %55 = arith.mulf %50, %54 : vector<12x12xf32>
    %56 = arith.truncf %55 : vector<12x12xf32> to vector<12x12xbf16>
    %57 = arith.truncf %39 : vector<12x16xf32> to vector<12x16xbf16>
    %cst_20 = arith.constant dense<0.000000e+00> : vector<12x16xf32>
    %58 = tpu.matmul %56, %57, %cst_20 {dimension_numbers = #tpu.dot_dimension_numbers<[1], [0], [0], [1], [0, 0, 1, 1], [], []>} : vector<12x12xbf16>, vector<12x16xbf16>, vector<12x16xf32> -> vector<12x16xf32>
    %59 = vector.extract_strided_slice %31 {offsets = [0, 16], sizes = [12, 16], strides = [1, 1]} : vector<12x96xf32> to vector<12x16xf32>
    %cst_21 = arith.constant 2.500000e-01 : f32
    %60 = vector.broadcast %cst_21 : f32 to vector<12x16xf32>
    %61 = arith.mulf %59, %60 : vector<12x16xf32>
    %62 = vector.extract_strided_slice %31 {offsets = [0, 48], sizes = [12, 16], strides = [1, 1]} : vector<12x96xf32> to vector<12x16xf32>
    %63 = vector.extract_strided_slice %31 {offsets = [0, 80], sizes = [12, 16], strides = [1, 1]} : vector<12x96xf32> to vector<12x16xf32>
    %64 = arith.truncf %61 : vector<12x16xf32> to vector<12x16xbf16>
    %65 = arith.truncf %62 : vector<12x16xf32> to vector<12x16xbf16>
    %66 = tpu.transpose %65, [1, 0] : vector<12x16xbf16> -> vector<16x12xbf16>
    %cst_22 = arith.constant dense<0.000000e+00> : vector<12x12xf32>
    %67 = tpu.matmul %64, %66, %cst_22 {dimension_numbers = #tpu.dot_dimension_numbers<[1], [0], [0], [1], [0, 0, 1, 1], [], []>} : vector<12x16xbf16>, vector<16x12xbf16>, vector<12x12xf32> -> vector<12x12xf32>
    %cst_23 = arith.constant -1.000000e+30 : f32
    %68 = vector.broadcast %cst_23 : f32 to vector<12x12xf32>
    %69 = arith.select %34, %67, %68 : vector<12x12xi1>, vector<12x12xf32>
    %cst_24 = arith.constant dense<0xFF800000> : vector<12xf32>
    %70 = vector.multi_reduction <maximumf>, %69, %cst_24 [1] : vector<12x12xf32> to vector<12xf32>
    %71 = vector.shape_cast %70 : vector<12xf32> to vector<12x1xf32>
    %72 = vector.broadcast %71 : vector<12x1xf32> to vector<12x12xf32>
    %73 = arith.subf %69, %72 : vector<12x12xf32>
    %74 = math.exp %73 : vector<12x12xf32>
    %cst_25 = arith.constant dense<0.000000e+00> : vector<12xf32>
    %75 = vector.multi_reduction <add>, %74, %cst_25 [1] : vector<12x12xf32> to vector<12xf32>
    %76 = vector.shape_cast %75 : vector<12xf32> to vector<12x1xf32>
    %77 = tpu.reciprocal %76 {approx = true} : vector<12x1xf32> -> vector<12x1xf32>
    %78 = vector.broadcast %77 : vector<12x1xf32> to vector<12x12xf32>
    %79 = arith.mulf %74, %78 : vector<12x12xf32>
    %80 = arith.truncf %79 : vector<12x12xf32> to vector<12x12xbf16>
    %81 = arith.truncf %63 : vector<12x16xf32> to vector<12x16xbf16>
    %cst_26 = arith.constant dense<0.000000e+00> : vector<12x16xf32>
    %82 = tpu.matmul %80, %81, %cst_26 {dimension_numbers = #tpu.dot_dimension_numbers<[1], [0], [0], [1], [0, 0, 1, 1], [], []>} : vector<12x12xbf16>, vector<12x16xbf16>, vector<12x16xf32> -> vector<12x16xf32>
    %83 = tpu.concatenate %58, %82 in 1 : vector<12x16xf32>, vector<12x16xf32> -> vector<12x32xf32>
    %84 = arith.truncf %83 : vector<12x32xf32> to vector<12x32xbf16>
    %c0_27 = arith.constant 0 : index
    %c0_28 = arith.constant 0 : index
    %85 = vector.load %arg6[%c0_27, %c0_28] : memref<32x32xbf16, #tpu.memory_space<vmem>>, vector<32x32xbf16>
    %cst_29 = arith.constant dense<0.000000e+00> : vector<12x32xf32>
    %86 = tpu.matmul %84, %85, %cst_29 {dimension_numbers = #tpu.dot_dimension_numbers<[1], [0], [0], [1], [0, 0, 1, 1], [], []>} : vector<12x32xbf16>, vector<32x32xbf16>, vector<12x32xf32> -> vector<12x32xf32>
    %c0_30 = arith.constant 0 : index
    %c0_31 = arith.constant 0 : index
    %87 = vector.load %arg7[%c0_30, %c0_31] : memref<1x32xf32, #tpu.memory_space<vmem>>, vector<1x32xf32>
    %88 = vector.broadcast %87 : vector<1x32xf32> to vector<12x32xf32>
    %89 = arith.addf %86, %88 : vector<12x32xf32>
    %90 = arith.addf %1, %89 : vector<12x32xf32>
    %c0_32 = arith.constant 0 : index
    %c0_33 = arith.constant 0 : index
    %c0_34 = arith.constant 0 : index
    %91 = vector.load %arg8[%c0_32, %c0_33, %c0_34] : memref<1x12x32xf32, #tpu.memory_space<vmem>>, vector<1x12x32xf32>
    %92 = vector.shape_cast %91 : vector<1x12x32xf32> to vector<12x32xf32>
    %93 = vector.shape_cast %90 : vector<12x32xf32> to vector<1x12x32xf32>
    tpu.vector_store %arg8[%c0_32, %c0_33, %c0_34], %93 {strides = array<i32>} : memref<1x12x32xf32, #tpu.memory_space<vmem>>, vector<1x12x32xf32>,
    return
  }
  func.func @transform_0(%arg0: i32) -> (i32, i32, i32) {
    %c0_i32 = arith.constant 0 : i32
    %c0_i32_0 = arith.constant 0 : i32
    %c0_i32_1 = arith.constant 0 : i32
    return %arg0, %c0_i32, %c0_i32_0 : i32, i32, i32
  }
  func.func @transform_1(%arg0: i32) -> (i32, i32) {
    %c0_i32 = arith.constant 0 : i32
    %c0_i32_0 = arith.constant 0 : i32
    %c0_i32_1 = arith.constant 0 : i32
    return %c0_i32, %c0_i32_0 : i32, i32
  }
  func.func @transform_2(%arg0: i32) -> (i32, i32) {
    %c0_i32 = arith.constant 0 : i32
    %c0_i32_0 = arith.constant 0 : i32
    %c0_i32_1 = arith.constant 0 : i32
    return %c0_i32, %c0_i32_0 : i32, i32
  }
  func.func @transform_3(%arg0: i32) -> (i32, i32) {
    %c0_i32 = arith.constant 0 : i32
    %c0_i32_0 = arith.constant 0 : i32
    %c0_i32_1 = arith.constant 0 : i32
    return %c0_i32, %c0_i32_0 : i32, i32
  }
  func.func @transform_4(%arg0: i32) -> (i32, i32) {
    %c0_i32 = arith.constant 0 : i32
    %c0_i32_0 = arith.constant 0 : i32
    %c0_i32_1 = arith.constant 0 : i32
    return %c0_i32, %c0_i32_0 : i32, i32
  }
  func.func @transform_5(%arg0: i32) -> (i32, i32) {
    %c0_i32 = arith.constant 0 : i32
    %c0_i32_0 = arith.constant 0 : i32
    %c0_i32_1 = arith.constant 0 : i32
    return %c0_i32, %c0_i32_0 : i32, i32
  }
  func.func @transform_6(%arg0: i32) -> (i32, i32) {
    %c0_i32 = arith.constant 0 : i32
    %c0_i32_0 = arith.constant 0 : i32
    %c0_i32_1 = arith.constant 0 : i32
    return %c0_i32, %c0_i32_0 : i32, i32
  }
  func.func @transform_7(%arg0: i32) -> (i32, i32, i32) {
    %c0_i32 = arith.constant 0 : i32
    %c0_i32_0 = arith.constant 0 : i32
    %c0_i32_1 = arith.constant 0 : i32
    return %arg0, %c0_i32, %c0_i32_0 : i32, i32, i32
  }
}

module attributes {stable_mosaic.version = 11 : i64} {
  func.func @_mlp_block_kernel(%arg0: i32, %arg1: memref<24x32xf32, #tpu.memory_space<vmem>>, %arg2: memref<1x32xf32, #tpu.memory_space<vmem>>, %arg3: memref<1x32xf32, #tpu.memory_space<vmem>>, %arg4: memref<32x128xbf16, #tpu.memory_space<vmem>>, %arg5: memref<1x128xf32, #tpu.memory_space<vmem>>, %arg6: memref<128x32xbf16, #tpu.memory_space<vmem>>, %arg7: memref<1x32xf32, #tpu.memory_space<vmem>>, %arg8: memref<24x32xf32, #tpu.memory_space<vmem>>) attributes {dimension_semantics = [#tpu.dimension_semantics<parallel>], iteration_bounds = array<i64: 1>, scalar_prefetch = 0 : i64, scratch_operands = 0 : i64, tpu.core_type = #tpu.core_type<tc>, window_params = [{transform_indices = @transform_0, window_bounds = array<i64: 24, 32>}, {pipeline_mode = #tpu.pipeline_mode<synchronous>, transform_indices = @transform_1, window_bounds = array<i64: 1, 32>}, {pipeline_mode = #tpu.pipeline_mode<synchronous>, transform_indices = @transform_2, window_bounds = array<i64: 1, 32>}, {pipeline_mode = #tpu.pipeline_mode<synchronous>, transform_indices = @transform_3, window_bounds = array<i64: 32, 128>}, {pipeline_mode = #tpu.pipeline_mode<synchronous>, transform_indices = @transform_4, window_bounds = array<i64: 1, 128>}, {pipeline_mode = #tpu.pipeline_mode<synchronous>, transform_indices = @transform_5, window_bounds = array<i64: 128, 32>}, {pipeline_mode = #tpu.pipeline_mode<synchronous>, transform_indices = @transform_6, window_bounds = array<i64: 1, 32>}, {transform_indices = @transform_7, window_bounds = array<i64: 24, 32>}]} {
    %c0 = arith.constant 0 : index
    %c0_0 = arith.constant 0 : index
    %0 = vector.load %arg1[%c0, %c0_0] : memref<24x32xf32, #tpu.memory_space<vmem>>, vector<24x32xf32>
    %c0_1 = arith.constant 0 : index
    %c0_2 = arith.constant 0 : index
    %1 = vector.load %arg2[%c0_1, %c0_2] : memref<1x32xf32, #tpu.memory_space<vmem>>, vector<1x32xf32>
    %c0_3 = arith.constant 0 : index
    %c0_4 = arith.constant 0 : index
    %2 = vector.load %arg3[%c0_3, %c0_4] : memref<1x32xf32, #tpu.memory_space<vmem>>, vector<1x32xf32>
    %cst = arith.constant dense<0.000000e+00> : vector<24xf32>
    %3 = vector.multi_reduction <add>, %0, %cst [1] : vector<24x32xf32> to vector<24xf32>
    %4 = vector.shape_cast %3 : vector<24xf32> to vector<24x1xf32>
    %cst_5 = arith.constant 3.200000e+01 : f32
    %5 = vector.broadcast %cst_5 : f32 to vector<24x1xf32>
    %6 = arith.divf %4, %5 : vector<24x1xf32>
    %7 = vector.broadcast %6 : vector<24x1xf32> to vector<24x32xf32>
    %8 = arith.subf %0, %7 : vector<24x32xf32>
    %9 = arith.mulf %8, %8 : vector<24x32xf32>
    %cst_6 = arith.constant dense<0.000000e+00> : vector<24xf32>
    %10 = vector.multi_reduction <add>, %9, %cst_6 [1] : vector<24x32xf32> to vector<24xf32>
    %11 = vector.shape_cast %10 : vector<24xf32> to vector<24x1xf32>
    %cst_7 = arith.constant 3.200000e+01 : f32
    %12 = vector.broadcast %cst_7 : f32 to vector<24x1xf32>
    %13 = arith.divf %11, %12 : vector<24x1xf32>
    %14 = vector.broadcast %6 : vector<24x1xf32> to vector<24x32xf32>
    %15 = arith.subf %0, %14 : vector<24x32xf32>
    %cst_8 = arith.constant 9.99999974E-6 : f32
    %16 = vector.broadcast %cst_8 : f32 to vector<24x1xf32>
    %17 = arith.addf %13, %16 : vector<24x1xf32>
    %18 = math.rsqrt %17 : vector<24x1xf32>
    %19 = vector.broadcast %18 : vector<24x1xf32> to vector<24x32xf32>
    %20 = arith.mulf %15, %19 : vector<24x32xf32>
    %21 = vector.broadcast %1 : vector<1x32xf32> to vector<24x32xf32>
    %22 = arith.mulf %20, %21 : vector<24x32xf32>
    %23 = vector.broadcast %2 : vector<1x32xf32> to vector<24x32xf32>
    %24 = arith.addf %22, %23 : vector<24x32xf32>
    %25 = arith.truncf %24 : vector<24x32xf32> to vector<24x32xbf16>
    %c0_9 = arith.constant 0 : index
    %c0_10 = arith.constant 0 : index
    %26 = vector.load %arg4[%c0_9, %c0_10] : memref<32x128xbf16, #tpu.memory_space<vmem>>, vector<32x128xbf16>
    %cst_11 = arith.constant dense<0.000000e+00> : vector<24x128xf32>
    %27 = tpu.matmul %25, %26, %cst_11 {dimension_numbers = #tpu.dot_dimension_numbers<[1], [0], [0], [1], [0, 0, 1, 1], [], []>} : vector<24x32xbf16>, vector<32x128xbf16>, vector<24x128xf32> -> vector<24x128xf32>
    %c0_12 = arith.constant 0 : index
    %c0_13 = arith.constant 0 : index
    %28 = vector.load %arg5[%c0_12, %c0_13] : memref<1x128xf32, #tpu.memory_space<vmem>>, vector<1x128xf32>
    %29 = vector.broadcast %28 : vector<1x128xf32> to vector<24x128xf32>
    %30 = arith.addf %27, %29 : vector<24x128xf32>
    %cst_14 = arith.constant 5.000000e-01 : f32
    %31 = vector.broadcast %cst_14 : f32 to vector<24x128xf32>
    %32 = arith.mulf %31, %30 : vector<24x128xf32>
    %cst_15 = arith.constant 4.471500e-02 : f32
    %33 = vector.broadcast %cst_15 : f32 to vector<24x128xf32>
    %34 = arith.mulf %33, %30 : vector<24x128xf32>
    %35 = arith.mulf %34, %30 : vector<24x128xf32>
    %36 = arith.mulf %35, %30 : vector<24x128xf32>
    %37 = arith.addf %30, %36 : vector<24x128xf32>
    %cst_16 = arith.constant 0.797884583 : f32
    %38 = vector.broadcast %cst_16 : f32 to vector<24x128xf32>
    %39 = arith.mulf %38, %37 : vector<24x128xf32>
    %40 = math.tanh %39 : vector<24x128xf32>
    %cst_17 = arith.constant 1.000000e+00 : f32
    %41 = vector.broadcast %cst_17 : f32 to vector<24x128xf32>
    %42 = arith.addf %41, %40 : vector<24x128xf32>
    %43 = arith.mulf %32, %42 : vector<24x128xf32>
    %44 = arith.truncf %43 : vector<24x128xf32> to vector<24x128xbf16>
    %c0_18 = arith.constant 0 : index
    %c0_19 = arith.constant 0 : index
    %45 = vector.load %arg6[%c0_18, %c0_19] : memref<128x32xbf16, #tpu.memory_space<vmem>>, vector<128x32xbf16>
    %cst_20 = arith.constant dense<0.000000e+00> : vector<24x32xf32>
    %46 = tpu.matmul %44, %45, %cst_20 {dimension_numbers = #tpu.dot_dimension_numbers<[1], [0], [0], [1], [0, 0, 1, 1], [], []>} : vector<24x128xbf16>, vector<128x32xbf16>, vector<24x32xf32> -> vector<24x32xf32>
    %c0_21 = arith.constant 0 : index
    %c0_22 = arith.constant 0 : index
    %47 = vector.load %arg7[%c0_21, %c0_22] : memref<1x32xf32, #tpu.memory_space<vmem>>, vector<1x32xf32>
    %48 = vector.broadcast %47 : vector<1x32xf32> to vector<24x32xf32>
    %49 = arith.addf %46, %48 : vector<24x32xf32>
    %50 = arith.addf %0, %49 : vector<24x32xf32>
    %c0_23 = arith.constant 0 : index
    %c0_24 = arith.constant 0 : index
    %51 = vector.load %arg8[%c0_23, %c0_24] : memref<24x32xf32, #tpu.memory_space<vmem>>, vector<24x32xf32>
    tpu.vector_store %arg8[%c0_23, %c0_24], %50 {strides = array<i32>} : memref<24x32xf32, #tpu.memory_space<vmem>>, vector<24x32xf32>,
    return
  }
  func.func @transform_0(%arg0: i32) -> (i32, i32) {
    %c0_i32 = arith.constant 0 : i32
    %c0_i32_0 = arith.constant 0 : i32
    return %arg0, %c0_i32 : i32, i32
  }
  func.func @transform_1(%arg0: i32) -> (i32, i32) {
    %c0_i32 = arith.constant 0 : i32
    %c0_i32_0 = arith.constant 0 : i32
    %c0_i32_1 = arith.constant 0 : i32
    return %c0_i32, %c0_i32_0 : i32, i32
  }
  func.func @transform_2(%arg0: i32) -> (i32, i32) {
    %c0_i32 = arith.constant 0 : i32
    %c0_i32_0 = arith.constant 0 : i32
    %c0_i32_1 = arith.constant 0 : i32
    return %c0_i32, %c0_i32_0 : i32, i32
  }
  func.func @transform_3(%arg0: i32) -> (i32, i32) {
    %c0_i32 = arith.constant 0 : i32
    %c0_i32_0 = arith.constant 0 : i32
    %c0_i32_1 = arith.constant 0 : i32
    return %c0_i32, %c0_i32_0 : i32, i32
  }
  func.func @transform_4(%arg0: i32) -> (i32, i32) {
    %c0_i32 = arith.constant 0 : i32
    %c0_i32_0 = arith.constant 0 : i32
    %c0_i32_1 = arith.constant 0 : i32
    return %c0_i32, %c0_i32_0 : i32, i32
  }
  func.func @transform_5(%arg0: i32) -> (i32, i32) {
    %c0_i32 = arith.constant 0 : i32
    %c0_i32_0 = arith.constant 0 : i32
    %c0_i32_1 = arith.constant 0 : i32
    return %c0_i32, %c0_i32_0 : i32, i32
  }
  func.func @transform_6(%arg0: i32) -> (i32, i32) {
    %c0_i32 = arith.constant 0 : i32
    %c0_i32_0 = arith.constant 0 : i32
    %c0_i32_1 = arith.constant 0 : i32
    return %c0_i32, %c0_i32_0 : i32, i32
  }
  func.func @transform_7(%arg0: i32) -> (i32, i32) {
    %c0_i32 = arith.constant 0 : i32
    %c0_i32_0 = arith.constant 0 : i32
    return %arg0, %c0_i32 : i32, i32
  }
}

module attributes {stable_mosaic.version = 11 : i64} {
  func.func @_lm_head_kernel(%arg0: i32, %arg1: i32, %arg2: memref<24x32xf32, #tpu.memory_space<vmem>>, %arg3: memref<1x32xf32, #tpu.memory_space<vmem>>, %arg4: memref<1x32xf32, #tpu.memory_space<vmem>>, %arg5: memref<64x32xbf16, #tpu.memory_space<vmem>>, %arg6: memref<24x64xf32, #tpu.memory_space<vmem>>) attributes {dimension_semantics = [#tpu.dimension_semantics<parallel>, #tpu.dimension_semantics<parallel>], iteration_bounds = array<i64: 1, 1>, scalar_prefetch = 0 : i64, scratch_operands = 0 : i64, tpu.core_type = #tpu.core_type<tc>, window_params = [{transform_indices = @transform_0, window_bounds = array<i64: 24, 32>}, {pipeline_mode = #tpu.pipeline_mode<synchronous>, transform_indices = @transform_1, window_bounds = array<i64: 1, 32>}, {pipeline_mode = #tpu.pipeline_mode<synchronous>, transform_indices = @transform_2, window_bounds = array<i64: 1, 32>}, {transform_indices = @transform_3, window_bounds = array<i64: 64, 32>}, {transform_indices = @transform_4, window_bounds = array<i64: 24, 64>}]} {
    %c0 = arith.constant 0 : index
    %c0_0 = arith.constant 0 : index
    %0 = vector.load %arg2[%c0, %c0_0] : memref<24x32xf32, #tpu.memory_space<vmem>>, vector<24x32xf32>
    %c0_1 = arith.constant 0 : index
    %c0_2 = arith.constant 0 : index
    %1 = vector.load %arg3[%c0_1, %c0_2] : memref<1x32xf32, #tpu.memory_space<vmem>>, vector<1x32xf32>
    %c0_3 = arith.constant 0 : index
    %c0_4 = arith.constant 0 : index
    %2 = vector.load %arg4[%c0_3, %c0_4] : memref<1x32xf32, #tpu.memory_space<vmem>>, vector<1x32xf32>
    %cst = arith.constant dense<0.000000e+00> : vector<24xf32>
    %3 = vector.multi_reduction <add>, %0, %cst [1] : vector<24x32xf32> to vector<24xf32>
    %4 = vector.shape_cast %3 : vector<24xf32> to vector<24x1xf32>
    %cst_5 = arith.constant 3.200000e+01 : f32
    %5 = vector.broadcast %cst_5 : f32 to vector<24x1xf32>
    %6 = arith.divf %4, %5 : vector<24x1xf32>
    %7 = vector.broadcast %6 : vector<24x1xf32> to vector<24x32xf32>
    %8 = arith.subf %0, %7 : vector<24x32xf32>
    %9 = arith.mulf %8, %8 : vector<24x32xf32>
    %cst_6 = arith.constant dense<0.000000e+00> : vector<24xf32>
    %10 = vector.multi_reduction <add>, %9, %cst_6 [1] : vector<24x32xf32> to vector<24xf32>
    %11 = vector.shape_cast %10 : vector<24xf32> to vector<24x1xf32>
    %cst_7 = arith.constant 3.200000e+01 : f32
    %12 = vector.broadcast %cst_7 : f32 to vector<24x1xf32>
    %13 = arith.divf %11, %12 : vector<24x1xf32>
    %14 = vector.broadcast %6 : vector<24x1xf32> to vector<24x32xf32>
    %15 = arith.subf %0, %14 : vector<24x32xf32>
    %cst_8 = arith.constant 9.99999974E-6 : f32
    %16 = vector.broadcast %cst_8 : f32 to vector<24x1xf32>
    %17 = arith.addf %13, %16 : vector<24x1xf32>
    %18 = math.rsqrt %17 : vector<24x1xf32>
    %19 = vector.broadcast %18 : vector<24x1xf32> to vector<24x32xf32>
    %20 = arith.mulf %15, %19 : vector<24x32xf32>
    %21 = vector.broadcast %1 : vector<1x32xf32> to vector<24x32xf32>
    %22 = arith.mulf %20, %21 : vector<24x32xf32>
    %23 = vector.broadcast %2 : vector<1x32xf32> to vector<24x32xf32>
    %24 = arith.addf %22, %23 : vector<24x32xf32>
    %25 = arith.truncf %24 : vector<24x32xf32> to vector<24x32xbf16>
    %c0_9 = arith.constant 0 : index
    %c0_10 = arith.constant 0 : index
    %26 = vector.load %arg5[%c0_9, %c0_10] : memref<64x32xbf16, #tpu.memory_space<vmem>>, vector<64x32xbf16>
    %27 = tpu.transpose %26, [1, 0] : vector<64x32xbf16> -> vector<32x64xbf16>
    %cst_11 = arith.constant dense<0.000000e+00> : vector<24x64xf32>
    %28 = tpu.matmul %25, %27, %cst_11 {dimension_numbers = #tpu.dot_dimension_numbers<[1], [0], [0], [1], [0, 0, 1, 1], [], []>} : vector<24x32xbf16>, vector<32x64xbf16>, vector<24x64xf32> -> vector<24x64xf32>
    %c0_12 = arith.constant 0 : index
    %c0_13 = arith.constant 0 : index
    %29 = vector.load %arg6[%c0_12, %c0_13] : memref<24x64xf32, #tpu.memory_space<vmem>>, vector<24x64xf32>
    tpu.vector_store %arg6[%c0_12, %c0_13], %28 {strides = array<i32>} : memref<24x64xf32, #tpu.memory_space<vmem>>, vector<24x64xf32>,
    return
  }
  func.func @transform_0(%arg0: i32, %arg1: i32) -> (i32, i32) {
    %c0_i32 = arith.constant 0 : i32
    %c0_i32_0 = arith.constant 0 : i32
    return %arg0, %c0_i32 : i32, i32
  }
  func.func @transform_1(%arg0: i32, %arg1: i32) -> (i32, i32) {
    %c0_i32 = arith.constant 0 : i32
    %c0_i32_0 = arith.constant 0 : i32
    %c0_i32_1 = arith.constant 0 : i32
    return %c0_i32, %c0_i32_0 : i32, i32
  }
  func.func @transform_2(%arg0: i32, %arg1: i32) -> (i32, i32) {
    %c0_i32 = arith.constant 0 : i32
    %c0_i32_0 = arith.constant 0 : i32
    %c0_i32_1 = arith.constant 0 : i32
    return %c0_i32, %c0_i32_0 : i32, i32
  }
  func.func @transform_3(%arg0: i32, %arg1: i32) -> (i32, i32) {
    %c0_i32 = arith.constant 0 : i32
    %c0_i32_0 = arith.constant 0 : i32
    return %arg1, %c0_i32 : i32, i32
  }
  func.func @transform_4(%arg0: i32, %arg1: i32) -> (i32, i32) {
    %c0_i32 = arith.constant 0 : i32
    return %arg0, %arg1 : i32, i32
  }
}

</mosaic_0001>

<bundles_post_ra>
// kernel: clip_caption_forward.7
= control target key start
LH: loop header
LB: loop body
LE: loop exit
PB: predicated region body
PF: predicated region fallthrough
CT: control target
= control target key end

     0   :  { %8 = vsyncpa [#allocation4], 0  ;;  %s136_s15 = smov [#allocation3]   ;;  %s137_s17 = smov 64   ;;  %s175_s0 = inlined_call_operand.vmem [shape: f32[2,32], index: 0, kind: input, shape index: {}]   ;;  %s176_s1 = inlined_call_operand.hbm [shape: bf16[32,64], index: 1, kind: input, shape index: {}]   ;;  %s177_s2 = inlined_call_operand.vmem [shape: f32[1,64], index: 2, kind: input, shape index: {}]   ;;  %s178_s3 = inlined_call_operand.vmem [shape: f32[2,64], index: 3, kind: output, shape index: {}]  }
   0x1   :  { %s15_s14 = sshll.u32 %s176_s1, 4  ;;  %s17_s16 = sshll.u32 %s136_s15, 4  ;;  %s16_s14 = int_to_ptr.hbm [resolvable:$true] %s15_s14  ;;  %s18_s16 = int_to_ptr.vmem [resolvable:$true] %s17_s16 }
   0x2   :  { %s138_s18 = smov 4  }
   0x3   :  { %23 = dma.hbm_to_vmem [thread:$0]  %s16_s14, 256, %s18_s16, [#allocation4], %s137_s17, %s137_s17, %s138_s18  }
   0x4   :  { %134 = dma.done.wait [#allocation4], 256  }
   0x5   :  { %135 = vsyncadd [#allocation4], 4294967040  ;;  %vm35_vm0 = vcmask 517120   ;;  %v139_v0 = vmov 0.0   ;;  %v102_v1 = vld [vmem:[#allocation3 + $0x8] sm:$0xff]  ;;  %v101_v2 = vld [vmem:[#allocation3] sm:$0xff] }
   0x6   :  { %36 = vst.msk [vmem:[#allocation2] sm:$0x3] %vm35_vm0, %v139_v0  ;;  %66 = vmatpush.bf16.msra.mxu0 %v102_v1  ;;  %v38_v3 = vld [vmem:[%s175_s0] sm:$0x3]  ;;  %vm56_vm1 = vcmask 261120  }
   0x7   :  { %v39_v4 = vpack.c.bf16 %v38_v3, %v38_v3  ;;  %v107_v8 = vld [vmem:[%s177_s2] ss:$0 sm:$0xff] }
   0xa   :  { %67 = vmatpush.bf16.msra.mxu0 %v101_v2 }
   0xd   :  { %100 = vmatmul.msk.bf16.vlgmr.msra.gmra.mxu0 %vm56_vm1, %v39_v4  ;;  %v37_v5 = vld [vmem:[#allocation2] sm:$0x3] }
  0x8a   :  { %v69_v6 = vpop.f32.mrf.mxu0 }
  0x8b   :  { %v73_v7 = vadd.f32 %v69_v6, %v37_v5 }
  0x8d   :  { %75 = vst.msk [vmem:[#allocation2] sm:$0x3] %vm35_vm0, %v73_v7 }
  0x92   :  { %v71_v9 = vpop.f32.mrf.mxu0 }
  0x94   :  { %v79_v10 = vld [vmem:[#allocation2] sm:$0x3] }
  0x95   :  { %v84_v11 = vadd.f32 %v107_v8, %v79_v10 }
  0x97   :  { %108 = vtanh.f32 %v84_v11 }
  0x9d   :  { %v109_v12 = vpop.eup %108 }
  0x9e   :  { %86 = vst.msk [vmem:[%s178_s3] sm:$0x3] %vm35_vm0, %v109_v12 }
  0x9f   :  { %91 = vsyncpa [#allocation4], 1 }

// kernel: clip_caption_forward.8
= control target key start
LH: loop header
LB: loop body
LE: loop exit
PB: predicated region body
PF: predicated region fallthrough
CT: control target
= control target key end

     0   :  { %v111_v1 = vmov 0.0   ;;  %vm55_vm0 = vcmask 523264   ;;  %s153_s1 = inlined_call_operand.vmem [shape: bf16[64,128], index: 1, kind: input, shape index: {}]   ;;  %s154_s2 = inlined_call_operand.vmem [shape: f32[1,128], index: 2, kind: input, shape index: {}]   ;;  %s155_s0 = inlined_call_operand.vmem [shape: f32[2,64], index: 0, kind: input, shape index: {}]   ;;  %s156_s3 = inlined_call_operand.vmem [shape: f32[2,128], index: 3, kind: output, shape index: {}]  }
   0x1   :  { %v108_v0 = vld [vmem:[%s153_s1 + $0x18] sm:$0xff]  ;;  %19 = vst [vmem:[#allocation2] sm:$0x3] %v111_v1  ;;  %v107_v2 = vld [vmem:[%s153_s1 + $0x10] sm:$0xff]  ;;  %v106_v3 = vld [vmem:[%s153_s1 + $0x8] sm:$0xff] }
   0x2   :  { %63 = vmatpush.bf16.msra.mxu0 %v108_v0  ;;  %v105_v4 = vld [vmem:[%s153_s1] sm:$0xff] }
   0x3   :  { %v21_v5 = vld [vmem:[%s155_s0] sm:$0x3] }
   0x4   :  { %v22_v6 = vpack.c.bf16 %v21_v5, %v21_v5  ;;  %v110_v10 = vld [vmem:[%s154_s2] ss:$0 sm:$0xff] }
   0x6   :  { %64 = vmatpush.bf16.msra.mxu0 %v107_v2 }
   0x8   :  { %v20_v7 = vld [vmem:[#allocation2] sm:$0x3] }
   0xa   :  { %65 = vmatpush.bf16.msra.mxu0 %v106_v3 }
   0xe   :  { %66 = vmatpush.bf16.msra.mxu0 %v105_v4 }
  0x11   :  { %104 = vmatmul.msk.bf16.vlgmr.msra.gmra.mxu0 %vm55_vm0, %v22_v6 }
  0x8e   :  { %v68_v8 = vpop.f32.mrf.mxu0 }
  0x8f   :  { %v72_v9 = vadd.f32 %v68_v8, %v20_v7 }
  0x91   :  { %73 = vst [vmem:[#allocation2] sm:$0x3] %v72_v9 }
  0x96   :  { %v70_v11 = vpop.f32.mrf.mxu0 }
  0x98   :  { %v77_v12 = vld [vmem:[#allocation2] sm:$0x3] }
  0x99   :  { %v82_v13 = vadd.f32 %v110_v10, %v77_v12 }
  0x9b   :  { %83 = vst [vmem:[%s156_s3] sm:$0x3] %v82_v13 }

// kernel: clip_caption_forward.10
= control target key start
LH: loop header
LB: loop body
LE: loop exit
PB: predicated region body
PF: predicated region fallthrough
CT: control target
= control target key end

     0   :  { %vm32_vm0 = vcmask 261120   ;;  %v368_v6 = vmov 32.0   ;;  %s500_s0 = inlined_call_operand.vmem [shape: f32[24,32], index: 0, kind: input, shape index: {}]   ;;  %s501_s1 = inlined_call_operand.vmem [shape: f32[1,32], index: 1, kind: input, shape index: {}]   ;;  %s502_s2 = inlined_call_operand.vmem [shape: f32[1,32], index: 2, kind: input, shape index: {}]   ;;  %s503_s4 = inlined_call_operand.vmem [shape: f32[1,128], index: 4, kind: input, shape index: {}]   ;;  %s504_s3 = inlined_call_operand.vmem [shape: bf16[32,128], index: 3, kind: input, shape index: {}]   ;;  %s505_s6 = inlined_call_operand.vmem [shape: f32[1,32], index: 6, kind: input, shape index: {}]   ;;  %s506_s5 = inlined_call_operand.vmem [shape: bf16[128,32], index: 5, kind: input, shape index: {}]   ;;  %s507_s7 = inlined_call_operand.vmem [shape: f32[24,32], index: 7, kind: output, shape index: {}]  }
   0x1   :  { %v412_v0 = vld [vmem:[%s500_s0] sm:$0xff]  ;;  %v417_v1 = vld [vmem:[%s500_s0 + $0x10] sm:$0xff]  ;;  %v426_v4 = vld [vmem:[%s500_s0 + $0x8] sm:$0xff]  ;;  %354 = vrcp.f32 %v368_v6 }
   0x2   :  { %v33_v2 = vsel %vm32_vm0, %v412_v0, 0.0  ;;  %v39_v3 = vsel %vm32_vm0, %v417_v1, 0.0  ;;  %v36_v5 = vsel %vm32_vm0, %v426_v4, 0.0  ;;  %v332_v28 = vld [vmem:[%s504_s3 + $0x8] sm:$0xff]  ;;  %v331_v31 = vld [vmem:[%s504_s3] sm:$0xff] }
   0x3   :  { %34 = vadd.xlane.f32.xlu0 %v33_v2  ;;  %40 = vadd.xlane.f32.xlu1 %v39_v3  ;;  %v350_v53 = vld [vmem:[%s501_s1] ss:$0 sm:$0xff] }
   0x4   :  { %152 = vmatpush.bf16.msra.mxu0 %v332_v28  ;;  %v351_v60 = vld [vmem:[%s502_s2] ss:$0 sm:$0xff] }
   0x7   :  { %v355_v7 = vpop.eup %354 }
   0x8   :  { %v43_v8 = vmul.f32 32.0, %v355_v7  ;;  %vm47_vm1 = vweird.f32 %v355_v7  ;;  %153 = vmatpush.bf16.msra.mxu0 %v331_v31 }
   0xa   :  { %v44_v9 = vsub.f32 1.0, %v43_v8 }
   0xb   :  { %37 = vadd.xlane.f32.xlu0 %v36_v5 }
   0xc   :  { %v45_v10 = vmul.f32 %v355_v7, %v44_v9 }
   0xe   :  { %v46_v11 = vadd.f32 %v355_v7, %v45_v10 }
  0x10   :  { %v48_v12 = vsel %vm47_vm1, %v355_v7, %v46_v11 }
  0x76   :  { %v35_v13 = vpop.xlane.xlu0 %34  ;;  %v41_v17 = vpop.xlane.xlu1 %40 }
  0x77   :  { %v49_v14 = vmul.f32 %v48_v12, %v35_v13  ;;  %v51_v21 = vmul.f32 %v48_v12, %v41_v17  ;;  %v339_v13 = vld [vmem:[%s506_s5 + $0x30] sm:$0xff] }
  0x78   :  { %v335_v17 = vld [vmem:[%s506_s5 + $0x10] sm:$0xff] }
  0x79   :  { %v52_v15 = vsub.f32 %v412_v0, %v49_v14  ;;  %v434_v23 = vsub.f32 %v417_v1, %v51_v21  ;;  %v338_v14 = vld [vmem:[%s506_s5 + $0x28] sm:$0xff] }
  0x7b   :  { %v55_v16 = vmul.f32 %v52_v15, %v52_v15  ;;  %v57_v26 = vmul.f32 %v434_v23, %v434_v23 }
  0x7d   :  { %v58_v18 = vsel %vm32_vm0, %v55_v16, 0.0  ;;  %v64_v27 = vsel %vm32_vm0, %v57_v26, 0.0  ;;  %v336_v16 = vld [vmem:[%s506_s5 + $0x18] sm:$0xff] }
  0x7e   :  { %59 = vadd.xlane.f32.xlu1 %v58_v18  ;;  %v38_v19 = vpop.xlane.xlu0 %37  ;;  %v334_v18 = vld [vmem:[%s506_s5 + $0x8] sm:$0xff] }
  0x7f   :  { %v50_v20 = vmul.f32 %v48_v12, %v38_v19  ;;  %v333_v19 = vld [vmem:[%s506_s5] sm:$0xff] }
  0x81   :  { %v53_v22 = vsub.f32 %v426_v4, %v50_v20  ;;  %v352_v20 = vld [vmem:[%s503_s4] ss:$0 sm:$0xff] }
  0x83   :  { %v56_v24 = vmul.f32 %v53_v22, %v53_v22 }
  0x85   :  { %v61_v25 = vsel %vm32_vm0, %v56_v24, 0.0 }
  0x86   :  { %62 = vadd.xlane.f32.xlu2 %v61_v25 }
  0x8e   :  { %65 = vadd.xlane.f32.xlu2 %v64_v27 }
  0xf1   :  { %v60_v29 = vpop.xlane.xlu1 %59 }
  0xf2   :  { %v67_v30 = vmul.f32 %v60_v29, %v48_v12 }
  0xf4   :  { %v70_v32 = vadd.f32 1e-05, %v67_v30 }
  0xf6   :  { %356 = vrsqrt.f32 %v70_v32  ;;  %vm79_vm3 = vweird.f32 %v70_v32 }
  0xf9   :  { %v63_v33 = vpop.xlane.xlu2 %62 }
  0xfa   :  { %v68_v34 = vmul.f32 %v63_v33, %v48_v12 }
  0xfc   :  { %v357_v35 = vpop.eup %356  ;;  %v71_v36 = vadd.f32 1e-05, %v68_v34 }
  0xfd   :  { %v74_v37 = vmul.f32 %v357_v35, %v70_v32  ;;  %vm80_vm2 = vweird.f32 %v357_v35 }
  0xfe   :  { %358 = vrsqrt.f32 %v71_v36  ;;  %vm81_vm4 = vmor %vm79_vm3, %vm80_vm2  ;;  %vm89_vm6 = vweird.f32 %v71_v36 }
  0xff   :  { %v75_v38 = vmul.f32 %v357_v35, %v74_v37 }
 0x101   :  { %v76_v39 = vmul.f32 0.5, %v75_v38  ;;  %v66_v40 = vpop.xlane.xlu2 %65 }
 0x102   :  { %v69_v41 = vmul.f32 %v66_v40, %v48_v12  ;;  %v340_v12 = vld [vmem:[%s506_s5 + $0x38] sm:$0xff] }
 0x103   :  { %v77_v42 = vsub.f32 1.5, %v76_v39  ;;  %261 = vmatpush.bf16.msra.mxu1 %v340_v12  ;;  %341 = vmatpush.bf16.msra.mxu2 %v340_v12 }
 0x104   :  { %v359_v43 = vpop.eup %358  ;;  %v72_v44 = vadd.f32 1e-05, %v69_v41 }
 0x105   :  { %v78_v45 = vmul.f32 %v357_v35, %v77_v42  ;;  %v84_v46 = vmul.f32 %v359_v43, %v71_v36  ;;  %vm90_vm5 = vweird.f32 %v359_v43 }
 0x106   :  { %360 = vrsqrt.f32 %v72_v44  ;;  %vm91_vm7 = vmor %vm89_vm6, %vm90_vm5  ;;  %vm99_vm8 = vweird.f32 %v72_v44 }
 0x107   :  { %v85_v47 = vmul.f32 %v359_v43, %v84_v46  ;;  %v82_v48 = vsel %vm81_vm4, %v357_v35, %v78_v45  ;;  %262 = vmatpush.bf16.msra.mxu1 %v339_v13  ;;  %342 = vmatpush.bf16.msra.mxu2 %v339_v13 }
 0x108   :  { %v103_v52 = vmul.f32 %v82_v48, %v52_v15  ;;  %v337_v15 = vld [vmem:[%s506_s5 + $0x20] sm:$0xff] }
 0x109   :  { %v86_v49 = vmul.f32 0.5, %v85_v47 }
 0x10a   :  { %v109_v59 = vmul.f32 %v350_v53, %v103_v52 }
 0x10b   :  { %v87_v50 = vsub.f32 1.5, %v86_v49  ;;  %263 = vmatpush.bf16.msra.mxu1 %v338_v14  ;;  %343 = vmatpush.bf16.msra.mxu2 %v338_v14 }
 0x10c   :  { %v361_v51 = vpop.eup %360  ;;  %v115_v2 = vadd.f32 %v351_v60, %v109_v59 }
 0x10d   :  { %v88_v54 = vmul.f32 %v359_v43, %v87_v50  ;;  %v94_v55 = vmul.f32 %v361_v51, %v72_v44  ;;  %vm100_vm9 = vweird.f32 %v361_v51 }
 0x10e   :  { %vm101_vm10 = vmor %vm99_vm8, %vm100_vm9 }
 0x10f   :  { %v92_v56 = vsel %vm91_vm7, %v359_v43, %v88_v54  ;;  %v95_v57 = vmul.f32 %v361_v51, %v94_v55  ;;  %264 = vmatpush.bf16.msra.mxu1 %v337_v15  ;;  %344 = vmatpush.bf16.msra.mxu2 %v337_v15 }
 0x110   :  { %v104_v58 = vmul.f32 %v92_v56, %v53_v22 }
 0x111   :  { %v96_v61 = vmul.f32 0.5, %v95_v57  ;;  %v353_v57 = vld [vmem:[%s505_s6] ss:$0 sm:$0xff] }
 0x112   :  { %v110_v62 = vmul.f32 %v350_v53, %v104_v58 }
 0x113   :  { %v97_v63 = vsub.f32 1.5, %v96_v61  ;;  %265 = vmatpush.bf16.msra.mxu1 %v336_v16  ;;  %345 = vmatpush.bf16.msra.mxu2 %v336_v16 }
 0x114   :  { %v116_v3 = vadd.f32 %v351_v60, %v110_v62 }
 0x115   :  { %v98_v5 = vmul.f32 %v361_v51, %v97_v63 }
 0x116   :  { %v118_v6 = vpack.c.bf16 %v116_v3, %v115_v2 }
 0x117   :  { %v102_v7 = vsel %vm101_vm10, %v361_v51, %v98_v5  ;;  %266 = vmatpush.bf16.msra.mxu1 %v335_v17  ;;  %346 = vmatpush.bf16.msra.mxu2 %v335_v17 }
 0x118   :  { %297 = vmatmul.msk.bf16.vlgmr.msra.gmra.mxu0 %vm32_vm0, %v118_v6  ;;  %v105_v8 = vmul.f32 %v102_v7, %v434_v23 }
 0x11a   :  { %v111_v9 = vmul.f32 %v350_v53, %v105_v8 }
 0x11b   :  { %267 = vmatpush.bf16.msra.mxu1 %v334_v18  ;;  %347 = vmatpush.bf16.msra.mxu2 %v334_v18 }
 0x11c   :  { %v117_v10 = vadd.f32 %v351_v60, %v111_v9 }
 0x11e   :  { %v119_v11 = vpack.c.bf16 %v117_v10, %v117_v10 }
 0x11f   :  { %268 = vmatpush.bf16.msra.mxu1 %v333_v19  ;;  %348 = vmatpush.bf16.msra.mxu2 %v333_v19 }
 0x128   :  { %298 = vmatmul.msk.bf16.gmra.mxu0 %vm32_vm0, %v119_v11 }
 0x195   :  { %v155_v21 = vpop.f32.mrf.mxu0 }
 0x196   :  { %v156_v22 = vadd.f32 %v352_v20, %v155_v21 }
 0x198   :  { %v167_v23 = vmul.f32 0.044715, %v156_v22  ;;  %v164_v46 = vmul.f32 0.5, %v156_v22 }
 0x19a   :  { %v170_v24 = vmul.f32 %v167_v23, %v156_v22 }
 0x19c   :  { %v173_v25 = vmul.f32 %v170_v24, %v156_v22 }
 0x19d   :  { %v157_v26 = vpop.f32.mrf.mxu0 }
 0x19e   :  { %v158_v27 = vadd.f32 %v352_v20, %v157_v26  ;;  %v176_v28 = vadd.f32 %v173_v25, %v156_v22 }
 0x1a0   :  { %v168_v29 = vmul.f32 0.044715, %v158_v27  ;;  %v179_v31 = vmul.f32 0.7978846, %v176_v28  ;;  %v165_v47 = vmul.f32 0.5, %v158_v27 }
 0x1a2   :  { %v171_v30 = vmul.f32 %v168_v29, %v158_v27  ;;  %362 = vtanh.f32 %v179_v31 }
 0x1a4   :  { %v174_v32 = vmul.f32 %v171_v30, %v158_v27 }
 0x1a5   :  { %v160_v33 = vpop.f32.mrf.mxu0 }
 0x1a6   :  { %v161_v34 = vadd.f32 %v352_v20, %v160_v33  ;;  %v177_v35 = vadd.f32 %v174_v32, %v158_v27 }
 0x1a8   :  { %v180_v36 = vmul.f32 0.7978846, %v177_v35  ;;  %v169_v37 = vmul.f32 0.044715, %v161_v34  ;;  %v363_v39 = vpop.eup %362  ;;  %v166_v53 = vmul.f32 0.5, %v161_v34 }
 0x1a9   :  { %v185_v43 = vadd.f32 1.0, %v363_v39 }
 0x1aa   :  { %364 = vtanh.f32 %v180_v36  ;;  %v172_v38 = vmul.f32 %v169_v37, %v161_v34 }
 0x1ab   :  { %v188_v49 = vmul.f32 %v185_v43, %v164_v46 }
 0x1ac   :  { %v175_v40 = vmul.f32 %v172_v38, %v161_v34 }
 0x1ad   :  { %v162_v41 = vpop.f32.mrf.mxu0 }
 0x1ae   :  { %v178_v42 = vadd.f32 %v175_v40, %v161_v34 }
 0x1b0   :  { %v365_v44 = vpop.eup %364  ;;  %v181_v45 = vmul.f32 0.7978846, %v178_v42 }
 0x1b1   :  { %v186_v48 = vadd.f32 1.0, %v365_v44 }
 0x1b2   :  { %366 = vtanh.f32 %v181_v45 }
 0x1b3   :  { %v189_v50 = vmul.f32 %v186_v48, %v165_v47 }
 0x1b5   :  { %v191_v51 = vpack.c.bf16 %v189_v50, %v188_v49 }
 0x1b7   :  { %269 = vmatmul.bf16.vlgmr.msra.gmra.mxu1 %v191_v51 }
 0x1b8   :  { %v367_v52 = vpop.eup %366 }
 0x1b9   :  { %v187_v54 = vadd.f32 1.0, %v367_v52 }
 0x1bb   :  { %v190_v55 = vmul.f32 %v187_v54, %v166_v53 }
 0x1bd   :  { %v192_v56 = vpack.c.bf16 %v190_v55, %v190_v55 }
 0x1bf   :  { %274 = vmatmul.bf16.vlgmr.msra.gmra.mxu2 %v192_v56 }
 0x234   :  { %v270_v58 = vpop.f32.mrf.mxu1 }
 0x235   :  { %v271_v59 = vadd.f32 %v353_v57, %v270_v58 }
 0x237   :  { %v279_v60 = vadd.f32 %v271_v59, %v412_v0 }
 0x239   :  { %282 = vst.msk [vmem:[%s507_s7] sm:$0xff] %vm32_vm0, %v279_v60 }
 0x23c   :  { %v272_v61 = vpop.f32.mrf.mxu1 }
 0x23d   :  { %v273_v62 = vadd.f32 %v353_v57, %v272_v61 }
 0x23f   :  { %v280_v63 = vadd.f32 %v273_v62, %v426_v4 }
 0x241   :  { %283 = vst.msk [vmem:[%s507_s7 + $0x8] sm:$0xff] %vm32_vm0, %v280_v63 }
 0x242   :  { %v275_v2 = vpop.f32.mrf.mxu2 }
 0x243   :  { %v276_v3 = vadd.f32 %v353_v57, %v275_v2 }
 0x245   :  { %v281_v5 = vadd.f32 %v276_v3, %v417_v1 }
 0x247   :  { %284 = vst.msk [vmem:[%s507_s7 + $0x10] sm:$0xff] %vm32_vm0, %v281_v5 }
 0x24a   :  { %v277_v0 = vpop.f32.mrf.mxu2 }

// kernel: clip_caption_forward.9
= control target key start
LH: loop header
LB: loop body
LE: loop exit
PB: predicated region body
PF: predicated region fallthrough
CT: control target
= control target key end

     0   :  { %s789_s24 = smov 0   ;;  %s879_s0 = inlined_call_operand.vmem [shape: f32[2,12,32], index: 0, kind: input, shape index: {}]   ;;  %s880_s1 = inlined_call_operand.vmem [shape: f32[1,32], index: 1, kind: input, shape index: {}]   ;;  %s881_s2 = inlined_call_operand.vmem [shape: f32[1,32], index: 2, kind: input, shape index: {}]   ;;  %s882_s3 = inlined_call_operand.vmem [shape: bf16[32,96], index: 3, kind: input, shape index: {}]   ;;  %s883_s4 = inlined_call_operand.vmem [shape: f32[1,96], index: 4, kind: input, shape index: {}]   ;;  %s884_s5 = inlined_call_operand.vmem [shape: bf16[32,32], index: 5, kind: input, shape index: {}]   ;;  %s885_s6 = inlined_call_operand.vmem [shape: f32[1,32], index: 6, kind: input, shape index: {}]   ;;  %s886_s7 = inlined_call_operand.vmem [shape: f32[2,12,32], index: 7, kind: output, shape index: {}]  }
   0x1 LB: > { %s649_s25 = sadd.s32 4294967295, %s740_s24   ;;  %p653_p0 = scmp.ge.s32.totalorder %s740_s24, 1  ;;  %s740_s24 = sphi %s789_s24, %s17_s24  }
   0x2   : > { %p237_p1 = scmp.lt.s32.totalorder %s740_s24, 3 }
   0x4   : > { %p238_p2 = pnand %p653_p0, %p237_p1 }
   0x5   : > { %p269_p3 = scmp.lt.s32.totalorder (!%p238_p2), %s649_s25, 1  ;;  %s743_s17 = smov (!%p238_p2), 96  }
   0x6   : > { %241 = sbr.rel (%p238_p2) target bundleno = 1322 (0x52a), region = 48  ;;  %s744_s18 = smov (!%p238_p2), 112  }
   0x7   : > { %s745_s19 = smov (!%p238_p2), 80   ;;  %s746_s20 = smov (!%p238_p2), 64  }
   0x8   : > { %s747_s21 = smov (!%p238_p2), 48   ;;  %s748_s27 = smov (!%p238_p2), 16  }
   0xb   : > { %s888_s25 = smov (!%p269_p3, %s649_s25), 1  ;;  %vm284_vm0 = vcmask 261120   ;;  %vm288_vm1 = vcmask 257024   ;;  %v742_v4 = vmov 32.0   ;;  %v685_v21 = vld [vmem:[%s882_s3 + $0x8] sm:$0xff]  ;;  %v684_v23 = vld [vmem:[%s882_s3] sm:$0xff] }
   0xc   : > { %s682_s26 = sshll.u32 %s888_s25, 4  ;;  %712 = vrcp.f32 %v742_v4  ;;  %377 = vmatpush.bf16.msra.mxu0 %v685_v21  ;;  %v708_v42 = vld [vmem:[%s880_s1] ss:$0 sm:$0xff]  ;;  %vm399_vm9 = vcmask 130048   ;;  %v385_v4 = vlaneseq  ;;  %vm422_vm11 = vcmask 97280  }
   0xd   : > { %s273_s29 = scalar_lea.vmem %s879_s0, %s682_s26  ;;  %v709_v47 = vld [vmem:[%s881_s2] ss:$0 sm:$0xff]  ;;  %vm426_vm13 = vcmask 93184   ;;  %vm452_vm14 = vcmask 1045504   ;;  %s278_s11 = scalar_lea.vmem %s886_s7, %s682_s26 }
   0xe   : > { %v805_v0 = vld [vmem:[%s273_s29] sm:$0xff]  ;;  %v809_v2 = vld [vmem:[%s273_s29 + $0x8] sm:$0xf] }
   0xf   : > { %v285_v1 = vsel %vm284_vm0, %v805_v0, 0.0  ;;  %v289_v3 = vsel %vm288_vm1, %v809_v2, 0.0  ;;  %v710_v53 = vld [vmem:[%s883_s4] ss:$0 sm:$0xff] }
  0x10   : > { %286 = vadd.xlane.f32.xlu0 %v285_v1  ;;  %378 = vmatpush.bf16.msra.mxu0 %v684_v23 }
  0x12   : > { %v713_v5 = vpop.eup %712 }
  0x13   : > { %v293_v6 = vmul.f32 32.0, %v713_v5  ;;  %vm297_vm2 = vweird.f32 %v713_v5 }
  0x15   : > { %v294_v7 = vsub.f32 1.0, %v293_v6  ;;  %v389_v6 = vand.u32 127, %v385_v4 }
  0x17   : > { %v295_v8 = vmul.f32 %v713_v5, %v294_v7 }
  0x18   : > { %290 = vadd.xlane.f32.xlu0 %v289_v3 }
  0x19   : > { %v296_v9 = vadd.f32 %v713_v5, %v295_v8 }
  0x1b   : > { %v298_v10 = vsel %vm297_vm2, %v713_v5, %v296_v9  ;;  %v386_v5 = vshrl.u32 %v385_v4, 7 }
  0x1d   : > { %vm390_vm10 = vcmp.le.s32.totalorder %v389_v6, %v386_v5 }
  0x83   : > { %v287_v11 = vpop.xlane.xlu0 %286 }
  0x84   : > { %v299_v12 = vmul.f32 %v298_v10, %v287_v11 }
  0x86   : > { %v301_v13 = vsub.f32 %v805_v0, %v299_v12 }
  0x88   : > { %v303_v14 = vmul.f32 %v301_v13, %v301_v13 }
  0x8a   : > { %v305_v15 = vsel %vm284_vm0, %v303_v14, 0.0 }
  0x8b   : > { %306 = vadd.xlane.f32.xlu1 %v305_v15  ;;  %v291_v16 = vpop.xlane.xlu0 %290 }
  0x8c   : > { %v300_v17 = vmul.f32 %v298_v10, %v291_v16 }
  0x8e   : > { %v302_v18 = vsub.f32 %v809_v2, %v300_v17 }
  0x90   : > { %v304_v19 = vmul.f32 %v302_v18, %v302_v18 }
  0x92   : > { %v308_v20 = vsel %vm288_vm1, %v304_v19, 0.0 }
  0x93   : > { %309 = vadd.xlane.f32.xlu1 %v308_v20 }
  0xfe   : > { %v307_v22 = vpop.xlane.xlu1 %306 }
  0xff   : > { %v311_v24 = vmul.f32 %v307_v22, %v298_v10 }
 0x101   : > { %v313_v25 = vadd.f32 1e-05, %v311_v24 }
 0x103   : > { %714 = vrsqrt.f32 %v313_v25  ;;  %vm321_vm4 = vweird.f32 %v313_v25 }
 0x106   : > { %v310_v26 = vpop.xlane.xlu1 %309 }
 0x107   : > { %v312_v27 = vmul.f32 %v310_v26, %v298_v10  ;;  %v387_v10 = vadd.s32 8, %v386_v5 }
 0x109   : > { %v715_v28 = vpop.eup %714  ;;  %v314_v29 = vadd.f32 1e-05, %v312_v27  ;;  %vm391_vm12 = vcmp.le.s32.totalorder %v389_v6, %v387_v10 }
 0x10a   : > { %v316_v30 = vmul.f32 %v715_v28, %v313_v25  ;;  %vm322_vm3 = vweird.f32 %v715_v28 }
 0x10b   : > { %716 = vrsqrt.f32 %v314_v29  ;;  %vm323_vm5 = vmor %vm321_vm4, %vm322_vm3  ;;  %vm331_vm7 = vweird.f32 %v314_v29 }
 0x10c   : > { %v317_v31 = vmul.f32 %v715_v28, %v316_v30 }
 0x10e   : > { %v318_v32 = vmul.f32 0.5, %v317_v31 }
 0x110   : > { %v319_v33 = vsub.f32 1.5, %v318_v32 }
 0x111   : > { %v717_v34 = vpop.eup %716 }
 0x112   : > { %v320_v35 = vmul.f32 %v715_v28, %v319_v33  ;;  %v326_v36 = vmul.f32 %v717_v34, %v314_v29  ;;  %vm332_vm6 = vweird.f32 %v717_v34 }
 0x113   : > { %vm333_vm8 = vmor %vm331_vm7, %vm332_vm6 }
 0x114   : > { %v327_v37 = vmul.f32 %v717_v34, %v326_v36  ;;  %v324_v38 = vsel %vm323_vm5, %v715_v28, %v320_v35 }
 0x115   : > { %v335_v41 = vmul.f32 %v324_v38, %v301_v13 }
 0x116   : > { %v328_v39 = vmul.f32 0.5, %v327_v37 }
 0x117   : > { %v340_v46 = vmul.f32 %v708_v42, %v335_v41 }
 0x118   : > { %v329_v40 = vsub.f32 1.5, %v328_v39 }
 0x119   : > { %v345_v49 = vadd.f32 %v709_v47, %v340_v46 }
 0x11a   : > { %v330_v43 = vmul.f32 %v717_v34, %v329_v40 }
 0x11c   : > { %v334_v44 = vsel %vm333_vm8, %v717_v34, %v330_v43 }
 0x11d   : > { %v336_v45 = vmul.f32 %v334_v44, %v302_v18 }
 0x11f   : > { %v341_v48 = vmul.f32 %v708_v42, %v336_v45 }
 0x121   : > { %v346_v50 = vadd.f32 %v709_v47, %v341_v48 }
 0x123   : > { %v347_v51 = vpack.c.bf16 %v346_v50, %v345_v49 }
 0x125   : > { %666 = vmatmul.msk.bf16.vlgmr.msra.gmra.mxu0 %vm284_vm0, %v347_v51 }
 0x1a2   : > { %v380_v52 = vpop.f32.mrf.mxu0 }
 0x1a3   : > { %v381_v54 = vadd.f32 %v710_v53, %v380_v52 }
 0x1a5   : > { %v392_v57 = vmul.f32 0.25, %v381_v54 }
 0x1aa   : > { %v382_v55 = vpop.f32.mrf.mxu0 }
 0x1ab   : > { %v383_v56 = vadd.f32 %v710_v53, %v382_v55 }
 0x1ad   : > { %v393_v58 = vmul.f32 0.25, %v383_v56  ;;  %v833_v59 = vpack.c.bf16 %v383_v56, %v381_v54 }
 0x1af   : > { %397 = vrot.lane.b32.xlu2 %v833_v59, %s743_s17  ;;  %v394_v60 = vpack.c.bf16 %v393_v58, %v392_v57  ;;  %v687_v58 = vld [vmem:[%s884_s5 + $0x8] sm:$0xff] }
 0x1b0   : > { %582 = vmatpush.bf16.msrb.mxu0 %v687_v58 }
 0x1b1   : > { %471 = vrot.lane.b32.xlu0 %v394_v60, %s744_s18 }
 0x1b7   : > { %473 = vrot.lane.b32.xlu2 %v833_v59, %s745_s19 }
 0x209   : > { %v398_v61 = vpop.permute.xlu2 %397 }
 0x20a   : > { %v404_v62 = vsel %vm399_vm9, %v398_v61, 0 }
 0x20b   : > { %413 = vmatpush.bf16.xpose.msra.mxu1 %v404_v62 }
 0x211   : > { %v474_v63 = vpop.permute.xlu2 %473 }
 0x212   : > { %667 = vmatmul.msk.bf16.vlgmr.msra.gmra.mxu1 %vm399_vm9, %v394_v60  ;;  %v479_v1 = vsel %vm399_vm9, %v474_v63, 0 }
 0x213   : > { %488 = vmatpush.bf16.xpose.msra.mxu3 %v479_v1  ;;  %v686_v1 = vld [vmem:[%s884_s5] sm:$0xff] }
 0x214   : > { %583 = vmatpush.bf16.msrb.mxu0 %v686_v1 }
 0x223   : > { %v472_v3 = vpop.permute.xlu0 %471 }
 0x224   : > { %669 = vmatmul.msk.bf16.vlgmr.msra.gmra.mxu3 %vm399_vm9, %v472_v3 }
 0x28f   : > { %v415_v7 = vpop.f32.mrf.mxu1 }
 0x290   : > { %v420_v8 = vsel %vm390_vm10, %v415_v7, -1e+30 }
 0x291   : > { %v423_v9 = vsel %vm422_vm11, %v420_v8, -inf }
 0x292   : > { %424 = vmax.xlane.f32.xlu1 %v423_v9  ;;  %v711_v9 = vld [vmem:[%s885_s6] ss:$0 sm:$0xff] }
 0x297   : > { %v417_v11 = vpop.f32.mrf.mxu1 }
 0x298   : > { %v421_v12 = vsel %vm391_vm12, %v417_v11, -1e+30 }
 0x299   : > { %v427_v13 = vsel %vm426_vm13, %v421_v12, -inf }
 0x29a   : > { %428 = vmax.xlane.f32.xlu2 %v427_v13 }
 0x2a7   : > { %v490_v14 = vpop.f32.mrf.mxu3 }
 0x2a8   : > { %v495_v15 = vsel %vm390_vm10, %v490_v14, -1e+30 }
 0x2a9   : > { %v497_v16 = vsel %vm422_vm11, %v495_v15, -inf }
 0x2aa   : > { %498 = vmax.xlane.f32.xlu1 %v497_v16 }
 0x2af   : > { %v492_v17 = vpop.f32.mrf.mxu3 }
 0x2b0   : > { %v496_v18 = vsel %vm391_vm12, %v492_v17, -1e+30 }
 0x2b1   : > { %v500_v19 = vsel %vm426_vm13, %v496_v18, -inf }
 0x2b2   : > { %501 = vmax.xlane.f32.xlu1 %v500_v19 }
 0x2cb   : > { %447 = vrot.lane.b32.xlu1 %v833_v59, %s746_s20 }
 0x305   : > { %v425_v20 = vpop.xlane.xlu1 %424 }
 0x306   : > { %v430_v21 = vsub.f32 %v420_v8, %v425_v20 }
 0x308   : > { %v432_v22 = vmul.f32 1.442695, %v430_v21 }
 0x30a   : > { %718 = vpow2.f32 %v432_v22 }
 0x30d   : > { %v429_v23 = vpop.xlane.xlu2 %428 }
 0x30e   : > { %v431_v24 = vsub.f32 %v421_v12, %v429_v23 }
 0x310   : > { %v719_v25 = vpop.eup %718  ;;  %v434_v26 = vmul.f32 1.442695, %v431_v24 }
 0x311   : > { %v436_v27 = vsel %vm422_vm11, %v719_v25, 0.0 }
 0x312   : > { %720 = vpow2.f32 %v434_v26  ;;  %437 = vadd.xlane.f32.xlu0 %v436_v27 }
 0x318   : > { %v721_v28 = vpop.eup %720 }
 0x319   : > { %v439_v29 = vsel %vm426_vm13, %v721_v28, 0.0 }
 0x31a   : > { %440 = vadd.xlane.f32.xlu1 %v439_v29 }
 0x31d   : > { %v499_v30 = vpop.xlane.xlu1 %498 }
 0x31e   : > { %v503_v31 = vsub.f32 %v495_v15, %v499_v30 }
 0x320   : > { %v505_v32 = vmul.f32 1.442695, %v503_v31 }
 0x322   : > { %722 = vpow2.f32 %v505_v32 }
 0x325   : > { %v502_v33 = vpop.xlane.xlu1 %501 }
 0x326   : > { %v504_v34 = vsub.f32 %v496_v18, %v502_v33 }
 0x328   : > { %v723_v35 = vpop.eup %722  ;;  %v507_v36 = vmul.f32 1.442695, %v504_v34 }
 0x329   : > { %v509_v37 = vsel %vm422_vm11, %v723_v35, 0.0 }
 0x32a   : > { %724 = vpow2.f32 %v507_v36  ;;  %510 = vadd.xlane.f32.xlu2 %v509_v37 }
 0x330   : > { %v725_v38 = vpop.eup %724 }
 0x331   : > { %v512_v39 = vsel %vm426_vm13, %v725_v38, 0.0 }
 0x332   : > { %513 = vadd.xlane.f32.xlu2 %v512_v39 }
 0x333   : > { %520 = vrot.lane.b32.xlu1 %v833_v59, %s747_s21 }
 0x33d   : > { %v448_v40 = vpop.permute.xlu1 %447 }
 0x33e   : > { %v454_v41 = vsel %vm452_vm14, %v448_v40, 0 }
 0x33f   : > { %463 = vmatpush.bf16.msra.mxu2 %v454_v41 }
 0x385   : > { %v438_v42 = vpop.xlane.xlu0 %437 }
 0x386   : > { %726 = vrcp.f32 %v438_v42 }
 0x38c   : > { %v727_v44 = vpop.eup %726 }
 0x38d   : > { %v441_v43 = vpop.xlane.xlu1 %440  ;;  %v444_v46 = vmul.f32 %v727_v44, %v719_v25 }
 0x38e   : > { %728 = vrcp.f32 %v441_v43 }
 0x394   : > { %v729_v45 = vpop.eup %728 }
 0x395   : > { %v445_v47 = vmul.f32 %v729_v45, %v721_v28 }
 0x397   : > { %v446_v48 = vpack.c.bf16 %v445_v47, %v444_v46 }
 0x399   : > { %668 = vmatmul.msk.bf16.vlgmr.msra.gmra.mxu2 %vm422_vm11, %v446_v48 }
 0x39d   : > { %v511_v49 = vpop.xlane.xlu2 %510 }
 0x39e   : > { %730 = vrcp.f32 %v511_v49 }
 0x3a4   : > { %v731_v53 = vpop.eup %730 }
 0x3a5   : > { %v521_v50 = vpop.permute.xlu1 %520  ;;  %v514_v51 = vpop.xlane.xlu2 %513  ;;  %v517_v55 = vmul.f32 %v731_v53, %v723_v35 }
 0x3a6   : > { %732 = vrcp.f32 %v514_v51  ;;  %v526_v52 = vsel %vm452_vm14, %v521_v50, 0 }
 0x3a7   : > { %535 = vmatpush.bf16.msrb.mxu2 %v526_v52 }
 0x3ac   : > { %v733_v54 = vpop.eup %732 }
 0x3ad   : > { %v518_v56 = vmul.f32 %v733_v54, %v725_v38 }
 0x3af   : > { %v519_v57 = vpack.c.bf16 %v518_v56, %v517_v55 }
 0x3b1   : > { %670 = vmatmul.msk.bf16.vlgmr.msrb.gmra.mxu2 %vm422_vm11, %v519_v57 }
 0x41c   : > { %v465_v59 = vpop.f32.mrf.mxu2 }
 0x424   : > { %v467_v60 = vpop.f32.mrf.mxu2 }
 0x434   : > { %v537_v61 = vpop.f32.mrf.mxu2 }
 0x43c   : > { %v539_v62 = vpop.f32.mrf.mxu2 }
 0x43d   : > { %v703_v63 = vpack.i.bf16 %v539_v62, %v537_v61 }
 0x43f   : > { %704 = vrot.lane.b32.xlu2 %v703_v63, %s748_s27 }
 0x499   : > { %v705_v3 = vpop.permute.xlu2 %704 }
 0x49a   : > { %v707_v4 = vunpack.i.h.bf16 %v705_v3  ;;  %v706_v5 = vunpack.i.l.bf16 %v705_v3 }
 0x49c   : > { %v551_v6 = vsel %vm399_vm9, %v467_v60, %v707_v4  ;;  %v550_v7 = vsel %vm399_vm9, %v465_v59, %v706_v5 }
 0x49d   : > { %v552_v8 = vpack.c.bf16 %v551_v6, %v550_v7 }
 0x49f   : > { %679 = vmatmul.msk.bf16.vlgmr.msrb.gmra.mxu0 %vm284_vm0, %v552_v8 }
 0x51c   : > { %v585_v10 = vpop.f32.mrf.mxu0 }
 0x51d   : > { %v586_v11 = vadd.f32 %v711_v9, %v585_v10 }
 0x51f   : > { %v590_v12 = vadd.f32 %v586_v11, %v805_v0 }
 0x521   : > { %592 = vst.msk [vmem:[%s278_s11] sm:$0xff] %vm284_vm0, %v590_v12 }
 0x524   : > { %v587_v13 = vpop.f32.mrf.mxu0 }
 0x525   : > { %v588_v14 = vadd.f32 %v711_v9, %v587_v13 }
 0x527   : > { %v591_v15 = vadd.f32 %v588_v14, %v809_v2 }
 0x529   : > { %593 = vst.msk [vmem:[%s278_s11 + $0x8] sm:$0xf] %vm288_vm1, %v591_v15 }
 0x52a PF: > { %s17_s24 = sadd.s32 1, %s740_s24  }
 0x52b   : > { %p14_p4 = scmp.ge.s32.totalorder %s17_s24, 4  }
 0x52d   :  { %16 = sbr.rel (!%p14_p4) target bundleno = 1 (0x1), region = 78 }

// kernel: clip_caption_forward.13
= control target key start
LH: loop header
LB: loop body
LE: loop exit
PB: predicated region body
PF: predicated region fallthrough
CT: control target
= control target key end

     0   :  { %vm23_vm0 = vcmask 261120   ;;  %v220_v6 = vmov 32.0   ;;  %vm175_vm11 = vcmask 523264   ;;  %s309_s0 = inlined_call_operand.vmem [shape: f32[24,32], index: 0, kind: input, shape index: {}]   ;;  %s310_s1 = inlined_call_operand.vmem [shape: f32[1,32], index: 1, kind: input, shape index: {}]   ;;  %s311_s2 = inlined_call_operand.vmem [shape: f32[1,32], index: 2, kind: input, shape index: {}]   ;;  %s312_s3 = inlined_call_operand.vmem [shape: bf16[64,32], index: 3, kind: input, shape index: {}]   ;;  %s313_s4 = inlined_call_operand.vmem [shape: f32[24,64], index: 4, kind: output, shape index: {}]  }
   0x1   :  { %v18_v0 = vld [vmem:[%s309_s0] sm:$0xff]  ;;  %v20_v1 = vld [vmem:[%s309_s0 + $0x10] sm:$0xff]  ;;  %v19_v4 = vld [vmem:[%s309_s0 + $0x8] sm:$0xff]  ;;  %212 = vrcp.f32 %v220_v6 }
   0x2   :  { %v24_v2 = vsel %vm23_vm0, %v18_v0, 0.0  ;;  %v30_v3 = vsel %vm23_vm0, %v20_v1, 0.0  ;;  %v27_v5 = vsel %vm23_vm0, %v19_v4, 0.0  ;;  %v204_v28 = vld [vmem:[%s312_s3 + $0x18] sm:$0xff]  ;;  %v203_v30 = vld [vmem:[%s312_s3 + $0x10] sm:$0xff]  ;;  %v202_v32 = vld [vmem:[%s312_s3 + $0x8] sm:$0xff] }
   0x3   :  { %25 = vadd.xlane.f32.xlu0 %v24_v2  ;;  %31 = vadd.xlane.f32.xlu1 %v30_v3  ;;  %v155_v29 = vsel %vm23_vm0, %v204_v28, 0  ;;  %v152_v31 = vsel %vm23_vm0, %v203_v30, 0  ;;  %v149_v33 = vsel %vm23_vm0, %v202_v32, 0  ;;  %v201_v34 = vld [vmem:[%s312_s3] sm:$0xff] }
   0x4   :  { %161 = vmatpush.bf16.xpose.msra.mxu0 %v155_v29  ;;  %205 = vmatpush.bf16.xpose.msra.mxu1 %v155_v29  ;;  %v146_v35 = vsel %vm23_vm0, %v201_v34, 0  ;;  %v210_v59 = vld [vmem:[%s310_s1] ss:$0 sm:$0xff] }
   0x5   :  { %v211_v2 = vld [vmem:[%s311_s2] ss:$0 sm:$0xff] }
   0x7   :  { %v213_v7 = vpop.eup %212 }
   0x8   :  { %v34_v8 = vmul.f32 32.0, %v213_v7  ;;  %vm38_vm1 = vweird.f32 %v213_v7 }
   0xa   :  { %v35_v9 = vsub.f32 1.0, %v34_v8 }
   0xb   :  { %28 = vadd.xlane.f32.xlu0 %v27_v5 }
   0xc   :  { %v36_v10 = vmul.f32 %v213_v7, %v35_v9  ;;  %162 = vmatpush.bf16.xpose.msra.mxu0 %v152_v31  ;;  %206 = vmatpush.bf16.xpose.msra.mxu1 %v152_v31 }
   0xe   :  { %v37_v11 = vadd.f32 %v213_v7, %v36_v10 }
  0x10   :  { %v39_v12 = vsel %vm38_vm1, %v213_v7, %v37_v11 }
  0x14   :  { %163 = vmatpush.bf16.xpose.msra.mxu0 %v149_v33  ;;  %207 = vmatpush.bf16.xpose.msra.mxu1 %v149_v33 }
  0x1c   :  { %164 = vmatpush.bf16.xpose.msra.mxu0 %v146_v35  ;;  %208 = vmatpush.bf16.xpose.msra.mxu1 %v146_v35 }
  0x76   :  { %v26_v13 = vpop.xlane.xlu0 %25  ;;  %v32_v17 = vpop.xlane.xlu1 %31 }
  0x77   :  { %v40_v14 = vmul.f32 %v39_v12, %v26_v13  ;;  %v42_v21 = vmul.f32 %v39_v12, %v32_v17 }
  0x79   :  { %v258_v15 = vsub.f32 %v18_v0, %v40_v14  ;;  %v265_v23 = vsub.f32 %v20_v1, %v42_v21 }
  0x7b   :  { %v46_v16 = vmul.f32 %v258_v15, %v258_v15  ;;  %v48_v26 = vmul.f32 %v265_v23, %v265_v23 }
  0x7d   :  { %v49_v18 = vsel %vm23_vm0, %v46_v16, 0.0  ;;  %v55_v27 = vsel %vm23_vm0, %v48_v26, 0.0 }
  0x7e   :  { %50 = vadd.xlane.f32.xlu1 %v49_v18  ;;  %v29_v19 = vpop.xlane.xlu0 %28 }
  0x7f   :  { %v41_v20 = vmul.f32 %v39_v12, %v29_v19 }
  0x81   :  { %v263_v22 = vsub.f32 %v19_v4, %v41_v20 }
  0x83   :  { %v47_v24 = vmul.f32 %v263_v22, %v263_v22 }
  0x85   :  { %v52_v25 = vsel %vm23_vm0, %v47_v24, 0.0 }
  0x86   :  { %53 = vadd.xlane.f32.xlu2 %v52_v25 }
  0x8e   :  { %56 = vadd.xlane.f32.xlu2 %v55_v27 }
  0xf1   :  { %v51_v36 = vpop.xlane.xlu1 %50 }
  0xf2   :  { %v58_v37 = vmul.f32 %v51_v36, %v39_v12 }
  0xf4   :  { %v61_v38 = vadd.f32 1e-05, %v58_v37 }
  0xf6   :  { %214 = vrsqrt.f32 %v61_v38  ;;  %vm70_vm3 = vweird.f32 %v61_v38 }
  0xf9   :  { %v54_v39 = vpop.xlane.xlu2 %53 }
  0xfa   :  { %v59_v40 = vmul.f32 %v54_v39, %v39_v12 }
  0xfc   :  { %v215_v41 = vpop.eup %214  ;;  %v62_v42 = vadd.f32 1e-05, %v59_v40 }
  0xfd   :  { %v65_v43 = vmul.f32 %v215_v41, %v61_v38  ;;  %vm71_vm2 = vweird.f32 %v215_v41 }
  0xfe   :  { %216 = vrsqrt.f32 %v62_v42  ;;  %vm72_vm4 = vmor %vm70_vm3, %vm71_vm2  ;;  %vm80_vm6 = vweird.f32 %v62_v42 }
  0xff   :  { %v66_v44 = vmul.f32 %v215_v41, %v65_v43 }
 0x101   :  { %v67_v45 = vmul.f32 0.5, %v66_v44  ;;  %v57_v46 = vpop.xlane.xlu2 %56 }
 0x102   :  { %v60_v47 = vmul.f32 %v57_v46, %v39_v12 }
 0x103   :  { %v68_v48 = vsub.f32 1.5, %v67_v45 }
 0x104   :  { %v217_v49 = vpop.eup %216  ;;  %v63_v50 = vadd.f32 1e-05, %v60_v47 }
 0x105   :  { %v69_v51 = vmul.f32 %v215_v41, %v68_v48  ;;  %v75_v52 = vmul.f32 %v217_v49, %v62_v42  ;;  %vm81_vm5 = vweird.f32 %v217_v49 }
 0x106   :  { %218 = vrsqrt.f32 %v63_v50  ;;  %vm82_vm7 = vmor %vm80_vm6, %vm81_vm5  ;;  %vm90_vm9 = vweird.f32 %v63_v50 }
 0x107   :  { %v76_v53 = vmul.f32 %v217_v49, %v75_v52  ;;  %v73_v54 = vsel %vm72_vm4, %v215_v41, %v69_v51 }
 0x108   :  { %v94_v58 = vmul.f32 %v73_v54, %v258_v15 }
 0x109   :  { %v77_v55 = vmul.f32 0.5, %v76_v53 }
 0x10a   :  { %v100_v1 = vmul.f32 %v210_v59, %v94_v58 }
 0x10b   :  { %v78_v56 = vsub.f32 1.5, %v77_v55 }
 0x10c   :  { %v219_v57 = vpop.eup %218  ;;  %v106_v6 = vadd.f32 %v211_v2, %v100_v1 }
 0x10d   :  { %v79_v60 = vmul.f32 %v217_v49, %v78_v56  ;;  %v85_v61 = vmul.f32 %v219_v57, %v63_v50  ;;  %vm91_vm8 = vweird.f32 %v219_v57 }
 0x10e   :  { %vm92_vm10 = vmor %vm90_vm9, %vm91_vm8 }
 0x10f   :  { %v83_v62 = vsel %vm82_vm7, %v217_v49, %v79_v60  ;;  %v86_v63 = vmul.f32 %v219_v57, %v85_v61 }
 0x110   :  { %v95_v0 = vmul.f32 %v83_v62, %v263_v22 }
 0x111   :  { %v87_v3 = vmul.f32 0.5, %v86_v63 }
 0x112   :  { %v101_v4 = vmul.f32 %v210_v59, %v95_v0 }
 0x113   :  { %v88_v5 = vsub.f32 1.5, %v87_v3 }
 0x114   :  { %v107_v7 = vadd.f32 %v211_v2, %v101_v4 }
 0x115   :  { %v89_v8 = vmul.f32 %v219_v57, %v88_v5 }
 0x116   :  { %v109_v9 = vpack.c.bf16 %v107_v7, %v106_v6 }
 0x117   :  { %v93_v10 = vsel %vm92_vm10, %v219_v57, %v89_v8 }
 0x118   :  { %199 = vmatmul.msk.bf16.vlgmr.msra.gmra.mxu0 %vm23_vm0, %v109_v9  ;;  %v96_v11 = vmul.f32 %v93_v10, %v265_v23 }
 0x11a   :  { %v102_v12 = vmul.f32 %v210_v59, %v96_v11 }
 0x11c   :  { %v108_v13 = vadd.f32 %v211_v2, %v102_v12 }
 0x11e   :  { %v110_v14 = vpack.c.bf16 %v108_v13, %v108_v13 }
 0x120   :  { %200 = vmatmul.msk.bf16.vlgmr.msra.gmra.mxu1 %vm23_vm0, %v110_v14 }
 0x195   :  { %v166_v15 = vpop.f32.mrf.mxu0 }
 0x196   :  { %176 = vst.msk [vmem:[%s313_s4] sm:$0xff] %vm175_vm11, %v166_v15 }
 0x19d   :  { %v168_v16 = vpop.f32.mrf.mxu0  ;;  %v171_v17 = vpop.f32.mrf.mxu1 }
 0x19e   :  { %177 = vst.msk [vmem:[%s313_s4 + $0x8] sm:$0xff] %vm175_vm11, %v168_v16 }
 0x19f   :  { %178 = vst.msk [vmem:[%s313_s4 + $0x10] sm:$0xff] %vm175_vm11, %v171_v17 }
 0x1a5   :  { %v173_v18 = vpop.f32.mrf.mxu1 }

</bundles_post_ra>
